<compile_context>
chip_gen: v7x
topology: tpu7x:2x2x1
jax: 0.10.0
libtpu: 0.0.40
codegen_flags: <defaults>
</compile_context>

<pallas_src>
import functools
import math

import jax
import jax.numpy as jnp
import numpy as np
from jax.experimental import pallas as pl
from jax.experimental.pallas import tpu as pltpu


# ----------------------------------------------------------------------------
# Pallas kernel: the whole layer stack, one layer per grid step
# ----------------------------------------------------------------------------
def gpt_stack_kernel(x_hbm, mask_ref,
                     wqkv_ref, bqkv_ref, wo_ref, w1_ref, b1_ref, w2_ref, vec_ref,
                     out_ref, act_ref, copy_sem, *, num_heads, batch):
    layer = pl.program_id(0)
    BS, H = act_ref.shape
    B = batch
    S = BS // B
    hd = H // num_heads
    scale = 1.0 / math.sqrt(hd)

    # Layer 0: DMA the embedding (kept in HBM via pl.ANY, so it never occupies
    # VMEM for the rest of the layer grid) into the resident activation carry.
    @pl.when(layer == 0)
    def _():
        cp = pltpu.make_async_copy(x_hbm, act_ref, copy_sem)
        cp.start()
        cp.wait()

    x = act_ref[...]                       # (B*S, H) f32 running activation
    mask = mask_ref[...]                   # (1 or B, S, S) additive mask

    # packed per-layer vectors: [ln1_g, ln1_b, ln2_g, ln2_b, bo, b2]
    ln1_g = vec_ref[0, 0:1, :]
    ln1_b = vec_ref[0, 1:2, :]
    ln2_g = vec_ref[0, 2:3, :]
    ln2_b = vec_ref[0, 3:4, :]
    bo = vec_ref[0, 4:5, :]
    b2 = vec_ref[0, 5:6, :]

    def layernorm(v, g, b):
        mu = jnp.mean(v, axis=-1, keepdims=True)
        d = v - mu
        var = jnp.mean(d * d, axis=-1, keepdims=True)
        return d * jax.lax.rsqrt(var + 1e-5) * g + b

    def bf16(a):
        return a.astype(jnp.bfloat16)

    # --- attention sub-block -------------------------------------------------
    h1 = layernorm(x, ln1_g, ln1_b)                               # f32
    qkv = jnp.dot(bf16(h1), wqkv_ref[0],
                  preferred_element_type=jnp.float32) + bqkv_ref[0]   # (BS, 3H)
    # H-aligned (>=128-lane) slices of the fused projection; scale folded into q
    q3 = bf16(qkv[:, 0:H] * scale).reshape(B, S, H)
    k3 = bf16(qkv[:, H:2 * H]).reshape(B, S, H)
    v3 = bf16(qkv[:, 2 * H:3 * H]).reshape(B, S, H)

    # Per-head attention with the out-projection fused into the accumulation:
    #   attn = sum_h ctx_h @ wo[h*hd:(h+1)*hd, :]
    # -> no (BS, H) attention slab, no sub-128-lane masked stores.
    attn = jnp.zeros((BS, H), jnp.float32)
    for hidx in range(num_heads):
        sl = slice(hidx * hd, (hidx + 1) * hd)
        s = jnp.einsum('bqd,bkd->bqk', q3[:, :, sl], k3[:, :, sl],
                       preferred_element_type=jnp.float32)        # (B, S, S) f32
        s = s + mask                                              # broadcast over batch
        s = s - jnp.max(s, axis=-1, keepdims=True)
        p = jnp.exp(s)
        p = p / jnp.sum(p, axis=-1, keepdims=True)                # exact softmax
        ctx = jnp.einsum('bqk,bkd->bqd', bf16(p), v3[:, :, sl],
                         preferred_element_type=jnp.float32)      # (B, S, hd) f32
        attn = attn + jnp.dot(bf16(ctx.reshape(BS, hd)),
                              wo_ref[0, sl, :],
                              preferred_element_type=jnp.float32)

    x1 = x + attn + bo                                            # residual 1

    # --- MLP sub-block -------------------------------------------------------
    h2 = layernorm(x1, ln2_g, ln2_b)
    m = jnp.dot(bf16(h2), w1_ref[0],
                preferred_element_type=jnp.float32) + b1_ref[0]
    # exact (erf) GELU in f32, matching torch.nn.GELU() default
    # TODO(synk): switch to tanh-approx GELU if EUP becomes the binding slot on v5e.
    m = 0.5 * m * (1.0 + jax.lax.erf(m * (1.0 / math.sqrt(2.0))))
    y = jnp.dot(bf16(m), w2_ref[0],
                preferred_element_type=jnp.float32) + b2

    x2 = x1 + y                                                   # residual 2
    act_ref[...] = x2                                             # carry to next layer

    @pl.when(layer == pl.num_programs(0) - 1)
    def _():
        out_ref[...] = x2.astype(out_ref.dtype)


# ----------------------------------------------------------------------------
# Wrapper: BlockSpecs / grid / VMEM budget
# ----------------------------------------------------------------------------
def _vmem_limit_bytes(BS, S, H, I, Bm):
    per_layer = (H * 3 * H + H * H + H * I + I * H) * 2       # bf16 weights
    per_layer += (3 * H + I + 6 * H) * 4                      # f32 bias / gain pack
    resident = 2 * BS * H * 4 + Bm * S * S * 4                # act carry + out block + mask
    need = 2 * per_layer + resident + (8 << 20)               # x2 double buffer + headroom
    return int(min(max(need, 32 << 20), 64 << 20))


def gpt_stack_pallas(x2d, mask_add, stack, num_heads, batch):
    BS, H = x2d.shape
    B = batch
    S = BS // B
    L = stack["wqkv"].shape[0]
    I = stack["w1"].shape[2]
    Bm = mask_add.shape[0]

    def per_layer(shape):
        # one layer's slice per grid step -> double-buffered weight pipeline
        return pl.BlockSpec((1,) + shape, lambda l: (l,) + (0,) * len(shape))

    def resident(shape):
        # single block, resident across the whole layer grid
        return pl.BlockSpec(shape, lambda l: (0,) * len(shape))

    in_specs = [
        pl.BlockSpec(memory_space=pl.ANY),       # embeddings: stay in HBM, copied once
        resident((Bm, S, S)),                    # additive mask (compact, broadcast in-kernel)
        per_layer((H, 3 * H)),                   # fused wqkv
        per_layer((1, 3 * H)),                   # fused qkv bias
        per_layer((H, H)),                       # wo
        per_layer((H, I)),                       # w1
        per_layer((1, I)),                       # b1
        per_layer((I, H)),                       # w2
        per_layer((6, H)),                       # packed [ln1_g, ln1_b, ln2_g, ln2_b, bo, b2]
    ]

    return pl.pallas_call(
        functools.partial(gpt_stack_kernel, num_heads=num_heads, batch=B),
        out_shape=jax.ShapeDtypeStruct((BS, H), jnp.float32),
        grid=(L,),
        in_specs=in_specs,
        out_specs=resident((BS, H)),             # lane-dense (.., H) output block
        scratch_shapes=[pltpu.VMEM((BS, H), jnp.float32),   # activation carry
                        pltpu.SemaphoreType.DMA],           # embedding copy sem
        compiler_params=pltpu.CompilerParams(
            # layer axis carries the activation -> must stay sequential
            dimension_semantics=("arbitrary",),
            vmem_limit_bytes=_vmem_limit_bytes(BS, S, H, I, Bm)),
    )(x2d, mask_add,
      stack["wqkv"], stack["bqkv"], stack["wo"],
      stack["w1"], stack["b1"], stack["w2"], stack["vecs"])


# ----------------------------------------------------------------------------
# Plain-JAX glue: embeddings and mask preprocessing
# ----------------------------------------------------------------------------
def process_attention_mask(mask, batch_size):
    """(1 - mask) * -1e8; kept compact: (1, S, S) for 2-D masks (broadcast in-kernel)."""
    mask = jnp.asarray(mask, jnp.float32)
    if mask.ndim == 2:
        mask = mask[None, :, :]                 # (1, S, S)
    elif mask.ndim == 4:                        # (B, 1, S, S)
        mask = mask[:, 0, :, :]
    return (1.0 - mask) * -1e8


def gpt_forward(input_ids, mask, params, num_heads):
    B, S = input_ids.shape
    H = params["wte"].shape[1]
    h = params["wte"][input_ids] + params["wpe"][:S][None, :, :]
    mask_add = process_attention_mask(mask, B)
    out2d = gpt_stack_pallas(h.reshape(B * S, H).astype(jnp.float32),
                             mask_add, params["stack"], num_heads, batch=B)
    return out2d.reshape(B, S, H)


# ----------------------------------------------------------------------------
# Deterministic parameter initialization (stacked over layers, fused QKV, bf16)
# ----------------------------------------------------------------------------
def init_params(key, vocab, max_len, H, I, L):
    def nrm(k, shape, scale=0.02):
        return jax.random.normal(k, shape, jnp.float32) * scale

    k_wte, k_wpe, kl = jax.random.split(key, 3)
    ks = jax.random.split(kl, 8)
    bf = jnp.bfloat16
    wqkv = nrm(ks[0], (L, H, 3 * H)).astype(bf)
    bqkv = nrm(ks[1], (L, 1, 3 * H))
    wo = nrm(ks[2], (L, H, H)).astype(bf)
    bo = nrm(ks[3], (L, H))
    w1 = nrm(ks[4], (L, H, I)).astype(bf)
    b1 = nrm(ks[5], (L, 1, I))
    w2 = nrm(ks[6], (L, I, H)).astype(bf)
    b2 = nrm(ks[7], (L, H))
    ln1_g = jnp.ones((L, H), jnp.float32)
    ln1_b = jnp.zeros((L, H), jnp.float32)
    ln2_g = jnp.ones((L, H), jnp.float32)
    ln2_b = jnp.zeros((L, H), jnp.float32)
    vecs = jnp.stack([ln1_g, ln1_b, ln2_g, ln2_b, bo, b2], axis=1)   # (L, 6, H)
    stack = {"wqkv": wqkv, "bqkv": bqkv, "wo": wo,
             "w1": w1, "b1": b1, "w2": w2, "vecs": vecs}
    return {"wte": nrm(k_wte, (vocab, H)),
            "wpe": nrm(k_wpe, (max_len, H)),
            "stack": stack}


# ----------------------------------------------------------------------------
# Pure-JAX f32 reference (same bf16 weight values, f32 compute)
# ----------------------------------------------------------------------------
def ref_forward(input_ids, mask, params, num_heads):
    B, S = input_ids.shape
    H = params["wte"].shape[1]
    hd = H // num_heads
    h = params["wte"][input_ids] + params["wpe"][:S][None, :, :]
    mask4 = process_attention_mask(mask, B)[:, None, :, :]          # (Bm, 1, S, S)
    st = params["stack"]
    L = st["wqkv"].shape[0]
    f32 = lambda a: a.astype(jnp.float32)

    def ln(v, g, b):
        mu = v.mean(-1, keepdims=True)
        var = ((v - mu) ** 2).mean(-1, keepdims=True)
        return (v - mu) / jnp.sqrt(var + 1e-5) * g + b

    for l in range(L):
        vec = st["vecs"][l]
        x = h
        hh = ln(x, vec[0], vec[1])
        qkv = hh @ f32(st["wqkv"][l]) + st["bqkv"][l, 0]
        q = qkv[..., 0:H].reshape(B, S, num_heads, hd).transpose(0, 2, 1, 3)
        k = qkv[..., H:2 * H].reshape(B, S, num_heads, hd).transpose(0, 2, 1, 3)
        v = qkv[..., 2 * H:].reshape(B, S, num_heads, hd).transpose(0, 2, 1, 3)
        s = jnp.einsum("bhqd,bhkd->bhqk", q, k) / math.sqrt(hd) + mask4
        a = jax.nn.softmax(s, axis=-1)
        o = jnp.einsum("bhqk,bhkd->bhqd", a, v).transpose(0, 2, 1, 3).reshape(B, S, H)
        x1 = x + (o @ f32(st["wo"][l]) + vec[4])
        h2 = ln(x1, vec[2], vec[3])
        m = jax.nn.gelu(h2 @ f32(st["w1"][l]) + st["b1"][l, 0], approximate=False)
        h = x1 + (m @ f32(st["w2"][l]) + vec[5])
    return h


# ----------------------------------------------------------------------------
if __name__ == "__main__":
    # small GPT config
    B, S = 2, 16
    H, NH, I = 128, 4, 512
    VOCAB, MAX_LEN, NLAYERS = 100, 64, 2

    key = jax.random.PRNGKey(0)
    kp, kid = jax.random.split(key)
    params = init_params(kp, VOCAB, MAX_LEN, H, I, NLAYERS)

    input_ids = jax.random.randint(kid, (B, S), 0, VOCAB, dtype=jnp.int32)
    causal_mask = jnp.tril(jnp.ones((S, S), jnp.float32))   # 2-D mask, as in PyTorch path

    out = jax.block_until_ready(gpt_forward(input_ids, causal_mask, params, NH))
    ref = jax.block_until_ready(ref_forward(input_ids, causal_mask, params, NH))
    np.testing.assert_allclose(np.asarray(out), np.asarray(ref), rtol=2e-2, atol=2e-2)

    print("KERNEL_OK")
</pallas_src>

<mosaic_0001>
module attributes {stable_mosaic.version = 11 : i64} {
  func.func @gpt_stack_kernel(%arg0: i32, %arg1: memref<32x128xf32, #tpu.memory_space<any>>, %arg2: memref<1x16x16xf32, #tpu.memory_space<vmem>>, %arg3: memref<1x128x384xbf16, #tpu.memory_space<vmem>>, %arg4: memref<1x1x384xf32, #tpu.memory_space<vmem>>, %arg5: memref<1x128x128xbf16, #tpu.memory_space<vmem>>, %arg6: memref<1x128x512xbf16, #tpu.memory_space<vmem>>, %arg7: memref<1x1x512xf32, #tpu.memory_space<vmem>>, %arg8: memref<1x512x128xbf16, #tpu.memory_space<vmem>>, %arg9: memref<1x6x128xf32, #tpu.memory_space<vmem>>, %arg10: memref<32x128xf32, #tpu.memory_space<vmem>>, %arg11: memref<32x128xf32, #tpu.memory_space<vmem>>, %arg12: memref<!tpu.dma_semaphore, #tpu.memory_space<semaphore_mem>>) attributes {dimension_semantics = [#tpu.dimension_semantics<arbitrary>], iteration_bounds = array<i64: 2>, scalar_prefetch = 0 : i64, scratch_operands = 2 : i64, tpu.core_type = #tpu.core_type<tc>, window_params = [{}, {pipeline_mode = #tpu.pipeline_mode<synchronous>, transform_indices = @transform_1, window_bounds = array<i64: 1, 16, 16>}, {transform_indices = @transform_2, window_bounds = array<i64: 1, 128, 384>}, {transform_indices = @transform_3, window_bounds = array<i64: 1, 1, 384>}, {transform_indices = @transform_4, window_bounds = array<i64: 1, 128, 128>}, {transform_indices = @transform_5, window_bounds = array<i64: 1, 128, 512>}, {transform_indices = @transform_6, window_bounds = array<i64: 1, 1, 512>}, {transform_indices = @transform_7, window_bounds = array<i64: 1, 512, 128>}, {transform_indices = @transform_8, window_bounds = array<i64: 1, 6, 128>}, {pipeline_mode = #tpu.pipeline_mode<synchronous>, transform_indices = @transform_9, window_bounds = array<i64: 32, 128>}]} {
    %c0_i32 = arith.constant 0 : i32
    %0 = arith.cmpi eq, %arg0, %c0_i32 : i32
    %1 = arith.extui %0 : i1 to i32
    %c0_i32_0 = arith.constant 0 : i32
    %2 = arith.cmpi ne, %1, %c0_i32_0 : i32
    scf.if %2 {
      tpu.enqueue_dma source(%arg1 : memref<32x128xf32, #tpu.memory_space<any>>) target(%arg11 : memref<32x128xf32, #tpu.memory_space<vmem>>) target_semaphore(%arg12 : memref<!tpu.dma_semaphore, #tpu.memory_space<semaphore_mem>>)
      tpu.wait_dma2 semaphore(%arg12 : memref<!tpu.dma_semaphore, #tpu.memory_space<semaphore_mem>>) src(%arg1 : memref<32x128xf32, #tpu.memory_space<any>>) dst(%arg11 : memref<32x128xf32, #tpu.memory_space<vmem>>)
    } else {
    }
    %c0 = arith.constant 0 : index
    %c0_1 = arith.constant 0 : index
    %3 = vector.load %arg11[%c0, %c0_1] : memref<32x128xf32, #tpu.memory_space<vmem>>, vector<32x128xf32>
    %c0_2 = arith.constant 0 : index
    %c0_3 = arith.constant 0 : index
    %c0_4 = arith.constant 0 : index
    %4 = vector.load %arg2[%c0_2, %c0_3, %c0_4] : memref<1x16x16xf32, #tpu.memory_space<vmem>>, vector<1x16x16xf32>
    %c0_5 = arith.constant 0 : index
    %c0_6 = arith.constant 0 : index
    %c0_7 = arith.constant 0 : index
    %5 = vector.load %arg9[%c0_5, %c0_6, %c0_7] : memref<1x6x128xf32, #tpu.memory_space<vmem>>, vector<1x1x128xf32>
    %6 = vector.shape_cast %5 : vector<1x1x128xf32> to vector<1x128xf32>
    %c0_8 = arith.constant 0 : index
    %c1 = arith.constant 1 : index
    %c0_9 = arith.constant 0 : index
    %7 = vector.load %arg9[%c0_8, %c1, %c0_9] : memref<1x6x128xf32, #tpu.memory_space<vmem>>, vector<1x1x128xf32>
    %8 = vector.shape_cast %7 : vector<1x1x128xf32> to vector<1x128xf32>
    %c0_10 = arith.constant 0 : index
    %c2 = arith.constant 2 : index
    %c0_11 = arith.constant 0 : index
    %9 = vector.load %arg9[%c0_10, %c2, %c0_11] : memref<1x6x128xf32, #tpu.memory_space<vmem>>, vector<1x1x128xf32>
    %10 = vector.shape_cast %9 : vector<1x1x128xf32> to vector<1x128xf32>
    %c0_12 = arith.constant 0 : index
    %c3 = arith.constant 3 : index
    %c0_13 = arith.constant 0 : index
    %11 = vector.load %arg9[%c0_12, %c3, %c0_13] : memref<1x6x128xf32, #tpu.memory_space<vmem>>, vector<1x1x128xf32>
    %12 = vector.shape_cast %11 : vector<1x1x128xf32> to vector<1x128xf32>
    %c0_14 = arith.constant 0 : index
    %c4 = arith.constant 4 : index
    %c0_15 = arith.constant 0 : index
    %13 = vector.load %arg9[%c0_14, %c4, %c0_15] : memref<1x6x128xf32, #tpu.memory_space<vmem>>, vector<1x1x128xf32>
    %14 = vector.shape_cast %13 : vector<1x1x128xf32> to vector<1x128xf32>
    %c0_16 = arith.constant 0 : index
    %c5 = arith.constant 5 : index
    %c0_17 = arith.constant 0 : index
    %15 = vector.load %arg9[%c0_16, %c5, %c0_17] : memref<1x6x128xf32, #tpu.memory_space<vmem>>, vector<1x1x128xf32>
    %16 = vector.shape_cast %15 : vector<1x1x128xf32> to vector<1x128xf32>
    %cst = arith.constant dense<0.000000e+00> : vector<32xf32>
    %17 = vector.multi_reduction <add>, %3, %cst [1] : vector<32x128xf32> to vector<32xf32>
    %18 = vector.shape_cast %17 : vector<32xf32> to vector<32x1xf32>
    %cst_18 = arith.constant 1.280000e+02 : f32
    %19 = vector.broadcast %cst_18 : f32 to vector<32x1xf32>
    %20 = arith.divf %18, %19 : vector<32x1xf32>
    %21 = vector.broadcast %20 : vector<32x1xf32> to vector<32x128xf32>
    %22 = arith.subf %3, %21 : vector<32x128xf32>
    %23 = arith.mulf %22, %22 : vector<32x128xf32>
    %cst_19 = arith.constant dense<0.000000e+00> : vector<32xf32>
    %24 = vector.multi_reduction <add>, %23, %cst_19 [1] : vector<32x128xf32> to vector<32xf32>
    %25 = vector.shape_cast %24 : vector<32xf32> to vector<32x1xf32>
    %cst_20 = arith.constant 1.280000e+02 : f32
    %26 = vector.broadcast %cst_20 : f32 to vector<32x1xf32>
    %27 = arith.divf %25, %26 : vector<32x1xf32>
    %cst_21 = arith.constant 9.99999974E-6 : f32
    %28 = vector.broadcast %cst_21 : f32 to vector<32x1xf32>
    %29 = arith.addf %27, %28 : vector<32x1xf32>
    %30 = math.rsqrt %29 : vector<32x1xf32>
    %31 = vector.broadcast %30 : vector<32x1xf32> to vector<32x128xf32>
    %32 = arith.mulf %22, %31 : vector<32x128xf32>
    %33 = vector.broadcast %6 : vector<1x128xf32> to vector<32x128xf32>
    %34 = arith.mulf %32, %33 : vector<32x128xf32>
    %35 = vector.broadcast %8 : vector<1x128xf32> to vector<32x128xf32>
    %36 = arith.addf %34, %35 : vector<32x128xf32>
    %37 = arith.truncf %36 : vector<32x128xf32> to vector<32x128xbf16>
    %c0_22 = arith.constant 0 : index
    %c0_23 = arith.constant 0 : index
    %c0_24 = arith.constant 0 : index
    %38 = vector.load %arg3[%c0_22, %c0_23, %c0_24] : memref<1x128x384xbf16, #tpu.memory_space<vmem>>, vector<1x128x384xbf16>
    %39 = vector.shape_cast %38 : vector<1x128x384xbf16> to vector<128x384xbf16>
    %cst_25 = arith.constant dense<0.000000e+00> : vector<32x384xf32>
    %40 = tpu.matmul %37, %39, %cst_25 {dimension_numbers = #tpu.dot_dimension_numbers<[1], [0], [0], [1], [0, 0, 1, 1], [], []>} : vector<32x128xbf16>, vector<128x384xbf16>, vector<32x384xf32> -> vector<32x384xf32>
    %c0_26 = arith.constant 0 : index
    %c0_27 = arith.constant 0 : index
    %c0_28 = arith.constant 0 : index
    %41 = vector.load %arg4[%c0_26, %c0_27, %c0_28] : memref<1x1x384xf32, #tpu.memory_space<vmem>>, vector<1x1x384xf32>
    %42 = vector.shape_cast %41 : vector<1x1x384xf32> to vector<1x384xf32>
    %43 = vector.broadcast %42 : vector<1x384xf32> to vector<32x384xf32>
    %44 = arith.addf %40, %43 : vector<32x384xf32>
    %45 = vector.extract_strided_slice %44 {offsets = [0, 0], sizes = [32, 128], strides = [1, 1]} : vector<32x384xf32> to vector<32x128xf32>
    %cst_29 = arith.constant 0.176776692 : f32
    %46 = vector.broadcast %cst_29 : f32 to vector<32x128xf32>
    %47 = arith.mulf %45, %46 : vector<32x128xf32>
    %48 = arith.truncf %47 : vector<32x128xf32> to vector<32x128xbf16>
    %49 = vector.shape_cast %48 : vector<32x128xbf16> to vector<2x16x128xbf16>
    %50 = vector.extract_strided_slice %44 {offsets = [0, 128], sizes = [32, 128], strides = [1, 1]} : vector<32x384xf32> to vector<32x128xf32>
    %51 = arith.truncf %50 : vector<32x128xf32> to vector<32x128xbf16>
    %52 = vector.shape_cast %51 : vector<32x128xbf16> to vector<2x16x128xbf16>
    %53 = vector.extract_strided_slice %44 {offsets = [0, 256], sizes = [32, 128], strides = [1, 1]} : vector<32x384xf32> to vector<32x128xf32>
    %54 = arith.truncf %53 : vector<32x128xf32> to vector<32x128xbf16>
    %55 = vector.shape_cast %54 : vector<32x128xbf16> to vector<2x16x128xbf16>
    %cst_30 = arith.constant 0.000000e+00 : f32
    %56 = vector.broadcast %cst_30 : f32 to vector<32x128xf32>
    %57 = vector.extract_strided_slice %49 {offsets = [0, 0, 0], sizes = [2, 16, 32], strides = [1, 1, 1]} : vector<2x16x128xbf16> to vector<2x16x32xbf16>
    %58 = vector.extract_strided_slice %52 {offsets = [0, 0, 0], sizes = [2, 16, 32], strides = [1, 1, 1]} : vector<2x16x128xbf16> to vector<2x16x32xbf16>
    "tpu.trace_start"() <{level = 10 : i32, message = "bqd,bkd->bqk"}> : () -> ()
    %cst_31 = arith.constant dense<0.000000e+00> : vector<2x16x16xf32>
    %59 = tpu.matmul %57, %58, %cst_31 {dimension_numbers = #tpu.dot_dimension_numbers<[2], [2], [1], [1], [0, 0, 0, 1, 1, 1], [0], [0]>} : vector<2x16x32xbf16>, vector<2x16x32xbf16>, vector<2x16x16xf32> -> vector<2x16x16xf32>
    "tpu.trace_stop"() : () -> ()
    %60 = vector.broadcast %4 : vector<1x16x16xf32> to vector<2x16x16xf32>
    %61 = arith.addf %59, %60 : vector<2x16x16xf32>
    %cst_32 = arith.constant dense<0xFF800000> : vector<2x16xf32>
    %62 = vector.multi_reduction <maximumf>, %61, %cst_32 [2] : vector<2x16x16xf32> to vector<2x16xf32>
    %63 = vector.shape_cast %62 : vector<2x16xf32> to vector<2x16x1xf32>
    %64 = vector.broadcast %63 : vector<2x16x1xf32> to vector<2x16x16xf32>
    %65 = arith.subf %61, %64 : vector<2x16x16xf32>
    %66 = math.exp %65 : vector<2x16x16xf32>
    %cst_33 = arith.constant dense<0.000000e+00> : vector<2x16xf32>
    %67 = vector.multi_reduction <add>, %66, %cst_33 [2] : vector<2x16x16xf32> to vector<2x16xf32>
    %68 = vector.shape_cast %67 : vector<2x16xf32> to vector<2x16x1xf32>
    %69 = vector.broadcast %68 : vector<2x16x1xf32> to vector<2x16x16xf32>
    %70 = arith.divf %66, %69 : vector<2x16x16xf32>
    %71 = arith.truncf %70 : vector<2x16x16xf32> to vector<2x16x16xbf16>
    %72 = vector.extract_strided_slice %55 {offsets = [0, 0, 0], sizes = [2, 16, 32], strides = [1, 1, 1]} : vector<2x16x128xbf16> to vector<2x16x32xbf16>
    "tpu.trace_start"() <{level = 10 : i32, message = "bqk,bkd->bqd"}> : () -> ()
    %cst_34 = arith.constant dense<0.000000e+00> : vector<2x16x32xf32>
    %73 = tpu.matmul %71, %72, %cst_34 {dimension_numbers = #tpu.dot_dimension_numbers<[2], [1], [1], [2], [0, 0, 0, 1, 1, 2], [0], [0]>} : vector<2x16x16xbf16>, vector<2x16x32xbf16>, vector<2x16x32xf32> -> vector<2x16x32xf32>
    "tpu.trace_stop"() : () -> ()
    %74 = vector.shape_cast %73 : vector<2x16x32xf32> to vector<32x32xf32>
    %75 = arith.truncf %74 : vector<32x32xf32> to vector<32x32xbf16>
    %c0_35 = arith.constant 0 : index
    %c0_36 = arith.constant 0 : index
    %c0_37 = arith.constant 0 : index
    %76 = vector.load %arg5[%c0_35, %c0_36, %c0_37] : memref<1x128x128xbf16, #tpu.memory_space<vmem>>, vector<1x32x128xbf16>
    %77 = vector.shape_cast %76 : vector<1x32x128xbf16> to vector<32x128xbf16>
    %cst_38 = arith.constant dense<0.000000e+00> : vector<32x128xf32>
    %78 = tpu.matmul %75, %77, %cst_38 {dimension_numbers = #tpu.dot_dimension_numbers<[1], [0], [0], [1], [0, 0, 1, 1], [], []>} : vector<32x32xbf16>, vector<32x128xbf16>, vector<32x128xf32> -> vector<32x128xf32>
    %79 = arith.addf %56, %78 : vector<32x128xf32>
    %80 = vector.extract_strided_slice %49 {offsets = [0, 0, 32], sizes = [2, 16, 32], strides = [1, 1, 1]} : vector<2x16x128xbf16> to vector<2x16x32xbf16>
    %81 = vector.extract_strided_slice %52 {offsets = [0, 0, 32], sizes = [2, 16, 32], strides = [1, 1, 1]} : vector<2x16x128xbf16> to vector<2x16x32xbf16>
    "tpu.trace_start"() <{level = 10 : i32, message = "bqd,bkd->bqk"}> : () -> ()
    %cst_39 = arith.constant dense<0.000000e+00> : vector<2x16x16xf32>
    %82 = tpu.matmul %80, %81, %cst_39 {dimension_numbers = #tpu.dot_dimension_numbers<[2], [2], [1], [1], [0, 0, 0, 1, 1, 1], [0], [0]>} : vector<2x16x32xbf16>, vector<2x16x32xbf16>, vector<2x16x16xf32> -> vector<2x16x16xf32>
    "tpu.trace_stop"() : () -> ()
    %83 = vector.broadcast %4 : vector<1x16x16xf32> to vector<2x16x16xf32>
    %84 = arith.addf %82, %83 : vector<2x16x16xf32>
    %cst_40 = arith.constant dense<0xFF800000> : vector<2x16xf32>
    %85 = vector.multi_reduction <maximumf>, %84, %cst_40 [2] : vector<2x16x16xf32> to vector<2x16xf32>
    %86 = vector.shape_cast %85 : vector<2x16xf32> to vector<2x16x1xf32>
    %87 = vector.broadcast %86 : vector<2x16x1xf32> to vector<2x16x16xf32>
    %88 = arith.subf %84, %87 : vector<2x16x16xf32>
    %89 = math.exp %88 : vector<2x16x16xf32>
    %cst_41 = arith.constant dense<0.000000e+00> : vector<2x16xf32>
    %90 = vector.multi_reduction <add>, %89, %cst_41 [2] : vector<2x16x16xf32> to vector<2x16xf32>
    %91 = vector.shape_cast %90 : vector<2x16xf32> to vector<2x16x1xf32>
    %92 = vector.broadcast %91 : vector<2x16x1xf32> to vector<2x16x16xf32>
    %93 = arith.divf %89, %92 : vector<2x16x16xf32>
    %94 = arith.truncf %93 : vector<2x16x16xf32> to vector<2x16x16xbf16>
    %95 = vector.extract_strided_slice %55 {offsets = [0, 0, 32], sizes = [2, 16, 32], strides = [1, 1, 1]} : vector<2x16x128xbf16> to vector<2x16x32xbf16>
    "tpu.trace_start"() <{level = 10 : i32, message = "bqk,bkd->bqd"}> : () -> ()
    %cst_42 = arith.constant dense<0.000000e+00> : vector<2x16x32xf32>
    %96 = tpu.matmul %94, %95, %cst_42 {dimension_numbers = #tpu.dot_dimension_numbers<[2], [1], [1], [2], [0, 0, 0, 1, 1, 2], [0], [0]>} : vector<2x16x16xbf16>, vector<2x16x32xbf16>, vector<2x16x32xf32> -> vector<2x16x32xf32>
    "tpu.trace_stop"() : () -> ()
    %97 = vector.shape_cast %96 : vector<2x16x32xf32> to vector<32x32xf32>
    %98 = arith.truncf %97 : vector<32x32xf32> to vector<32x32xbf16>
    %c0_43 = arith.constant 0 : index
    %c32 = arith.constant 32 : index
    %c0_44 = arith.constant 0 : index
    %99 = vector.load %arg5[%c0_43, %c32, %c0_44] : memref<1x128x128xbf16, #tpu.memory_space<vmem>>, vector<1x32x128xbf16>
    %100 = vector.shape_cast %99 : vector<1x32x128xbf16> to vector<32x128xbf16>
    %cst_45 = arith.constant dense<0.000000e+00> : vector<32x128xf32>
    %101 = tpu.matmul %98, %100, %cst_45 {dimension_numbers = #tpu.dot_dimension_numbers<[1], [0], [0], [1], [0, 0, 1, 1], [], []>} : vector<32x32xbf16>, vector<32x128xbf16>, vector<32x128xf32> -> vector<32x128xf32>
    %102 = arith.addf %79, %101 : vector<32x128xf32>
    %103 = vector.extract_strided_slice %49 {offsets = [0, 0, 64], sizes = [2, 16, 32], strides = [1, 1, 1]} : vector<2x16x128xbf16> to vector<2x16x32xbf16>
    %104 = vector.extract_strided_slice %52 {offsets = [0, 0, 64], sizes = [2, 16, 32], strides = [1, 1, 1]} : vector<2x16x128xbf16> to vector<2x16x32xbf16>
    "tpu.trace_start"() <{level = 10 : i32, message = "bqd,bkd->bqk"}> : () -> ()
    %cst_46 = arith.constant dense<0.000000e+00> : vector<2x16x16xf32>
    %105 = tpu.matmul %103, %104, %cst_46 {dimension_numbers = #tpu.dot_dimension_numbers<[2], [2], [1], [1], [0, 0, 0, 1, 1, 1], [0], [0]>} : vector<2x16x32xbf16>, vector<2x16x32xbf16>, vector<2x16x16xf32> -> vector<2x16x16xf32>
    "tpu.trace_stop"() : () -> ()
    %106 = vector.broadcast %4 : vector<1x16x16xf32> to vector<2x16x16xf32>
    %107 = arith.addf %105, %106 : vector<2x16x16xf32>
    %cst_47 = arith.constant dense<0xFF800000> : vector<2x16xf32>
    %108 = vector.multi_reduction <maximumf>, %107, %cst_47 [2] : vector<2x16x16xf32> to vector<2x16xf32>
    %109 = vector.shape_cast %108 : vector<2x16xf32> to vector<2x16x1xf32>
    %110 = vector.broadcast %109 : vector<2x16x1xf32> to vector<2x16x16xf32>
    %111 = arith.subf %107, %110 : vector<2x16x16xf32>
    %112 = math.exp %111 : vector<2x16x16xf32>
    %cst_48 = arith.constant dense<0.000000e+00> : vector<2x16xf32>
    %113 = vector.multi_reduction <add>, %112, %cst_48 [2] : vector<2x16x16xf32> to vector<2x16xf32>
    %114 = vector.shape_cast %113 : vector<2x16xf32> to vector<2x16x1xf32>
    %115 = vector.broadcast %114 : vector<2x16x1xf32> to vector<2x16x16xf32>
    %116 = arith.divf %112, %115 : vector<2x16x16xf32>
    %117 = arith.truncf %116 : vector<2x16x16xf32> to vector<2x16x16xbf16>
    %118 = vector.extract_strided_slice %55 {offsets = [0, 0, 64], sizes = [2, 16, 32], strides = [1, 1, 1]} : vector<2x16x128xbf16> to vector<2x16x32xbf16>
    "tpu.trace_start"() <{level = 10 : i32, message = "bqk,bkd->bqd"}> : () -> ()
    %cst_49 = arith.constant dense<0.000000e+00> : vector<2x16x32xf32>
    %119 = tpu.matmul %117, %118, %cst_49 {dimension_numbers = #tpu.dot_dimension_numbers<[2], [1], [1], [2], [0, 0, 0, 1, 1, 2], [0], [0]>} : vector<2x16x16xbf16>, vector<2x16x32xbf16>, vector<2x16x32xf32> -> vector<2x16x32xf32>
    "tpu.trace_stop"() : () -> ()
    %120 = vector.shape_cast %119 : vector<2x16x32xf32> to vector<32x32xf32>
    %121 = arith.truncf %120 : vector<32x32xf32> to vector<32x32xbf16>
    %c0_50 = arith.constant 0 : index
    %c64 = arith.constant 64 : index
    %c0_51 = arith.constant 0 : index
    %122 = vector.load %arg5[%c0_50, %c64, %c0_51] : memref<1x128x128xbf16, #tpu.memory_space<vmem>>, vector<1x32x128xbf16>
    %123 = vector.shape_cast %122 : vector<1x32x128xbf16> to vector<32x128xbf16>
    %cst_52 = arith.constant dense<0.000000e+00> : vector<32x128xf32>
    %124 = tpu.matmul %121, %123, %cst_52 {dimension_numbers = #tpu.dot_dimension_numbers<[1], [0], [0], [1], [0, 0, 1, 1], [], []>} : vector<32x32xbf16>, vector<32x128xbf16>, vector<32x128xf32> -> vector<32x128xf32>
    %125 = arith.addf %102, %124 : vector<32x128xf32>
    %126 = vector.extract_strided_slice %49 {offsets = [0, 0, 96], sizes = [2, 16, 32], strides = [1, 1, 1]} : vector<2x16x128xbf16> to vector<2x16x32xbf16>
    %127 = vector.extract_strided_slice %52 {offsets = [0, 0, 96], sizes = [2, 16, 32], strides = [1, 1, 1]} : vector<2x16x128xbf16> to vector<2x16x32xbf16>
    "tpu.trace_start"() <{level = 10 : i32, message = "bqd,bkd->bqk"}> : () -> ()
    %cst_53 = arith.constant dense<0.000000e+00> : vector<2x16x16xf32>
    %128 = tpu.matmul %126, %127, %cst_53 {dimension_numbers = #tpu.dot_dimension_numbers<[2], [2], [1], [1], [0, 0, 0, 1, 1, 1], [0], [0]>} : vector<2x16x32xbf16>, vector<2x16x32xbf16>, vector<2x16x16xf32> -> vector<2x16x16xf32>
    "tpu.trace_stop"() : () -> ()
    %129 = vector.broadcast %4 : vector<1x16x16xf32> to vector<2x16x16xf32>
    %130 = arith.addf %128, %129 : vector<2x16x16xf32>
    %cst_54 = arith.constant dense<0xFF800000> : vector<2x16xf32>
    %131 = vector.multi_reduction <maximumf>, %130, %cst_54 [2] : vector<2x16x16xf32> to vector<2x16xf32>
    %132 = vector.shape_cast %131 : vector<2x16xf32> to vector<2x16x1xf32>
    %133 = vector.broadcast %132 : vector<2x16x1xf32> to vector<2x16x16xf32>
    %134 = arith.subf %130, %133 : vector<2x16x16xf32>
    %135 = math.exp %134 : vector<2x16x16xf32>
    %cst_55 = arith.constant dense<0.000000e+00> : vector<2x16xf32>
    %136 = vector.multi_reduction <add>, %135, %cst_55 [2] : vector<2x16x16xf32> to vector<2x16xf32>
    %137 = vector.shape_cast %136 : vector<2x16xf32> to vector<2x16x1xf32>
    %138 = vector.broadcast %137 : vector<2x16x1xf32> to vector<2x16x16xf32>
    %139 = arith.divf %135, %138 : vector<2x16x16xf32>
    %140 = arith.truncf %139 : vector<2x16x16xf32> to vector<2x16x16xbf16>
    %141 = vector.extract_strided_slice %55 {offsets = [0, 0, 96], sizes = [2, 16, 32], strides = [1, 1, 1]} : vector<2x16x128xbf16> to vector<2x16x32xbf16>
    "tpu.trace_start"() <{level = 10 : i32, message = "bqk,bkd->bqd"}> : () -> ()
    %cst_56 = arith.constant dense<0.000000e+00> : vector<2x16x32xf32>
    %142 = tpu.matmul %140, %141, %cst_56 {dimension_numbers = #tpu.dot_dimension_numbers<[2], [1], [1], [2], [0, 0, 0, 1, 1, 2], [0], [0]>} : vector<2x16x16xbf16>, vector<2x16x32xbf16>, vector<2x16x32xf32> -> vector<2x16x32xf32>
    "tpu.trace_stop"() : () -> ()
    %143 = vector.shape_cast %142 : vector<2x16x32xf32> to vector<32x32xf32>
    %144 = arith.truncf %143 : vector<32x32xf32> to vector<32x32xbf16>
    %c0_57 = arith.constant 0 : index
    %c96 = arith.constant 96 : index
    %c0_58 = arith.constant 0 : index
    %145 = vector.load %arg5[%c0_57, %c96, %c0_58] : memref<1x128x128xbf16, #tpu.memory_space<vmem>>, vector<1x32x128xbf16>
    %146 = vector.shape_cast %145 : vector<1x32x128xbf16> to vector<32x128xbf16>
    %cst_59 = arith.constant dense<0.000000e+00> : vector<32x128xf32>
    %147 = tpu.matmul %144, %146, %cst_59 {dimension_numbers = #tpu.dot_dimension_numbers<[1], [0], [0], [1], [0, 0, 1, 1], [], []>} : vector<32x32xbf16>, vector<32x128xbf16>, vector<32x128xf32> -> vector<32x128xf32>
    %148 = arith.addf %125, %147 : vector<32x128xf32>
    %149 = arith.addf %3, %148 : vector<32x128xf32>
    %150 = vector.broadcast %14 : vector<1x128xf32> to vector<32x128xf32>
    %151 = arith.addf %149, %150 : vector<32x128xf32>
    %cst_60 = arith.constant dense<0.000000e+00> : vector<32xf32>
    %152 = vector.multi_reduction <add>, %151, %cst_60 [1] : vector<32x128xf32> to vector<32xf32>
    %153 = vector.shape_cast %152 : vector<32xf32> to vector<32x1xf32>
    %cst_61 = arith.constant 1.280000e+02 : f32
    %154 = vector.broadcast %cst_61 : f32 to vector<32x1xf32>
    %155 = arith.divf %153, %154 : vector<32x1xf32>
    %156 = vector.broadcast %155 : vector<32x1xf32> to vector<32x128xf32>
    %157 = arith.subf %151, %156 : vector<32x128xf32>
    %158 = arith.mulf %157, %157 : vector<32x128xf32>
    %cst_62 = arith.constant dense<0.000000e+00> : vector<32xf32>
    %159 = vector.multi_reduction <add>, %158, %cst_62 [1] : vector<32x128xf32> to vector<32xf32>
    %160 = vector.shape_cast %159 : vector<32xf32> to vector<32x1xf32>
    %cst_63 = arith.constant 1.280000e+02 : f32
    %161 = vector.broadcast %cst_63 : f32 to vector<32x1xf32>
    %162 = arith.divf %160, %161 : vector<32x1xf32>
    %cst_64 = arith.constant 9.99999974E-6 : f32
    %163 = vector.broadcast %cst_64 : f32 to vector<32x1xf32>
    %164 = arith.addf %162, %163 : vector<32x1xf32>
    %165 = math.rsqrt %164 : vector<32x1xf32>
    %166 = vector.broadcast %165 : vector<32x1xf32> to vector<32x128xf32>
    %167 = arith.mulf %157, %166 : vector<32x128xf32>
    %168 = vector.broadcast %10 : vector<1x128xf32> to vector<32x128xf32>
    %169 = arith.mulf %167, %168 : vector<32x128xf32>
    %170 = vector.broadcast %12 : vector<1x128xf32> to vector<32x128xf32>
    %171 = arith.addf %169, %170 : vector<32x128xf32>
    %172 = arith.truncf %171 : vector<32x128xf32> to vector<32x128xbf16>
    %c0_65 = arith.constant 0 : index
    %c0_66 = arith.constant 0 : index
    %c0_67 = arith.constant 0 : index
    %173 = vector.load %arg6[%c0_65, %c0_66, %c0_67] : memref<1x128x512xbf16, #tpu.memory_space<vmem>>, vector<1x128x512xbf16>
    %174 = vector.shape_cast %173 : vector<1x128x512xbf16> to vector<128x512xbf16>
    %cst_68 = arith.constant dense<0.000000e+00> : vector<32x512xf32>
    %175 = tpu.matmul %172, %174, %cst_68 {dimension_numbers = #tpu.dot_dimension_numbers<[1], [0], [0], [1], [0, 0, 1, 1], [], []>} : vector<32x128xbf16>, vector<128x512xbf16>, vector<32x512xf32> -> vector<32x512xf32>
    %c0_69 = arith.constant 0 : index
    %c0_70 = arith.constant 0 : index
    %c0_71 = arith.constant 0 : index
    %176 = vector.load %arg7[%c0_69, %c0_70, %c0_71] : memref<1x1x512xf32, #tpu.memory_space<vmem>>, vector<1x1x512xf32>
    %177 = vector.shape_cast %176 : vector<1x1x512xf32> to vector<1x512xf32>
    %178 = vector.broadcast %177 : vector<1x512xf32> to vector<32x512xf32>
    %179 = arith.addf %175, %178 : vector<32x512xf32>
    %cst_72 = arith.constant 5.000000e-01 : f32
    %180 = vector.broadcast %cst_72 : f32 to vector<32x512xf32>
    %181 = arith.mulf %180, %179 : vector<32x512xf32>
    %cst_73 = arith.constant 0.707106769 : f32
    %182 = vector.broadcast %cst_73 : f32 to vector<32x512xf32>
    %183 = arith.mulf %179, %182 : vector<32x512xf32>
    %184 = math.erf %183 : vector<32x512xf32>
    %cst_74 = arith.constant 1.000000e+00 : f32
    %185 = vector.broadcast %cst_74 : f32 to vector<32x512xf32>
    %186 = arith.addf %185, %184 : vector<32x512xf32>
    %187 = arith.mulf %181, %186 : vector<32x512xf32>
    %188 = arith.truncf %187 : vector<32x512xf32> to vector<32x512xbf16>
    %c0_75 = arith.constant 0 : index
    %c0_76 = arith.constant 0 : index
    %c0_77 = arith.constant 0 : index
    %189 = vector.load %arg8[%c0_75, %c0_76, %c0_77] : memref<1x512x128xbf16, #tpu.memory_space<vmem>>, vector<1x512x128xbf16>
    %190 = vector.shape_cast %189 : vector<1x512x128xbf16> to vector<512x128xbf16>
    %cst_78 = arith.constant dense<0.000000e+00> : vector<32x128xf32>
    %191 = tpu.matmul %188, %190, %cst_78 {dimension_numbers = #tpu.dot_dimension_numbers<[1], [0], [0], [1], [0, 0, 1, 1], [], []>} : vector<32x512xbf16>, vector<512x128xbf16>, vector<32x128xf32> -> vector<32x128xf32>
    %192 = vector.broadcast %16 : vector<1x128xf32> to vector<32x128xf32>
    %193 = arith.addf %191, %192 : vector<32x128xf32>
    %194 = arith.addf %151, %193 : vector<32x128xf32>
    %c0_79 = arith.constant 0 : index
    %c0_80 = arith.constant 0 : index
    %195 = vector.load %arg11[%c0_79, %c0_80] : memref<32x128xf32, #tpu.memory_space<vmem>>, vector<32x128xf32>
    tpu.vector_store %arg11[%c0_79, %c0_80], %194 {strides = array<i32>} : memref<32x128xf32, #tpu.memory_space<vmem>>, vector<32x128xf32>,
    %c1_i32 = arith.constant 1 : i32
    %196 = arith.cmpi eq, %arg0, %c1_i32 : i32
    %197 = arith.extui %196 : i1 to i32
    %c0_i32_81 = arith.constant 0 : i32
    %198 = arith.cmpi ne, %197, %c0_i32_81 : i32
    scf.if %198 {
      %c0_82 = arith.constant 0 : index
      %c0_83 = arith.constant 0 : index
      %199 = vector.load %arg10[%c0_82, %c0_83] : memref<32x128xf32, #tpu.memory_space<vmem>>, vector<32x128xf32>
      tpu.vector_store %arg10[%c0_82, %c0_83], %194 {strides = array<i32>} : memref<32x128xf32, #tpu.memory_space<vmem>>, vector<32x128xf32>,
    } else {
    }
    return
  }
  func.func @transform_1(%arg0: i32) -> (i32, i32, i32) {
    %c0_i32 = arith.constant 0 : i32
    %c0_i32_0 = arith.constant 0 : i32
    %c0_i32_1 = arith.constant 0 : i32
    %c0_i32_2 = arith.constant 0 : i32
    return %c0_i32, %c0_i32_0, %c0_i32_1 : i32, i32, i32
  }
  func.func @transform_2(%arg0: i32) -> (i32, i32, i32) {
    %c0_i32 = arith.constant 0 : i32
    %c0_i32_0 = arith.constant 0 : i32
    %c0_i32_1 = arith.constant 0 : i32
    return %arg0, %c0_i32, %c0_i32_0 : i32, i32, i32
  }
  func.func @transform_3(%arg0: i32) -> (i32, i32, i32) {
    %c0_i32 = arith.constant 0 : i32
    %c0_i32_0 = arith.constant 0 : i32
    %c0_i32_1 = arith.constant 0 : i32
    return %arg0, %c0_i32, %c0_i32_0 : i32, i32, i32
  }
  func.func @transform_4(%arg0: i32) -> (i32, i32, i32) {
    %c0_i32 = arith.constant 0 : i32
    %c0_i32_0 = arith.constant 0 : i32
    %c0_i32_1 = arith.constant 0 : i32
    return %arg0, %c0_i32, %c0_i32_0 : i32, i32, i32
  }
  func.func @transform_5(%arg0: i32) -> (i32, i32, i32) {
    %c0_i32 = arith.constant 0 : i32
    %c0_i32_0 = arith.constant 0 : i32
    %c0_i32_1 = arith.constant 0 : i32
    return %arg0, %c0_i32, %c0_i32_0 : i32, i32, i32
  }
  func.func @transform_6(%arg0: i32) -> (i32, i32, i32) {
    %c0_i32 = arith.constant 0 : i32
    %c0_i32_0 = arith.constant 0 : i32
    %c0_i32_1 = arith.constant 0 : i32
    return %arg0, %c0_i32, %c0_i32_0 : i32, i32, i32
  }
  func.func @transform_7(%arg0: i32) -> (i32, i32, i32) {
    %c0_i32 = arith.constant 0 : i32
    %c0_i32_0 = arith.constant 0 : i32
    %c0_i32_1 = arith.constant 0 : i32
    return %arg0, %c0_i32, %c0_i32_0 : i32, i32, i32
  }
  func.func @transform_8(%arg0: i32) -> (i32, i32, i32) {
    %c0_i32 = arith.constant 0 : i32
    %c0_i32_0 = arith.constant 0 : i32
    %c0_i32_1 = arith.constant 0 : i32
    return %arg0, %c0_i32, %c0_i32_0 : i32, i32, i32
  }
  func.func @transform_9(%arg0: i32) -> (i32, i32) {
    %c0_i32 = arith.constant 0 : i32
    %c0_i32_0 = arith.constant 0 : i32
    %c0_i32_1 = arith.constant 0 : i32
    return %c0_i32, %c0_i32_0 : i32, i32
  }
}

</mosaic_0001>

<bundles_post_ra>
// kernel: tpu_custom_call.1
= control target key start
LH: loop header
LB: loop body
LE: loop exit
PB: predicated region body
PF: predicated region fallthrough
CT: control target
= control target key end

     0   :  { %s4939_s0 = inlined_call_operand.hbm [shape: f32[32,128], index: 0, kind: input, shape index: {}]   ;;  %s4940_s1 = inlined_call_operand.vmem [shape: f32[1,16,16], index: 1, kind: input, shape index: {}]   ;;  %s4941_s2 = inlined_call_operand.hbm [shape: bf16[2,128,384], index: 2, kind: input, shape index: {}]   ;;  %s4942_s3 = inlined_call_operand.vmem [shape: f32[2,1,384], index: 3, kind: input, shape index: {}]   ;;  %s4943_s4 = inlined_call_operand.hbm [shape: bf16[2,128,128], index: 4, kind: input, shape index: {}]   ;;  %s4944_s5 = inlined_call_operand.hbm [shape: bf16[2,128,512], index: 5, kind: input, shape index: {}]   ;;  %s4945_s6 = inlined_call_operand.vmem [shape: f32[2,1,512], index: 6, kind: input, shape index: {}]   ;;  %s4946_s7 = inlined_call_operand.hbm [shape: bf16[2,512,128], index: 7, kind: input, shape index: {}]   ;;  %s4947_s8 = inlined_call_operand.vmem [shape: f32[2,6,128], index: 8, kind: input, shape index: {}]   ;;  %s4948_s9 = inlined_call_operand.hbm [shape: f32[32,128], index: 9, kind: output, shape index: {}]  }
   0x1   :  { %4954 = sst [smem:[#allocation24_spill]] %s4941_s2 }
   0x2   :  { %4955 = sst [smem:[#allocation25_spill]] %s4943_s4 }
   0x3   :  { %4956 = sst [smem:[#allocation26_spill]] %s4944_s5 }
   0x4   :  { %4957 = sst [smem:[#allocation27_spill]] %s4946_s7 }
   0x5   :  { %14 = vsyncpa [#allocation5], 0 }
   0x6   :  { %16 = vsyncpa [#allocation5 + $0x1], 0 }
   0x7   :  { %17 = vsyncpa [#allocation8], 0 }
   0x8   :  { %19 = vsyncpa [#allocation8 + $0x1], 0 }
   0x9   :  { %20 = vsyncpa [#allocation11], 0 }
   0xa   :  { %22 = vsyncpa [#allocation11 + $0x1], 0 }
   0xb   :  { %23 = vsyncpa [#allocation6], 0  ;;  %s4192_s30 = smov 0   ;;  %s4194_s10 = smov 0  }
   0xc   :  { %s4196_s11 = smov 0   ;;  %s4198_s12 = smov 0  }
   0xd LB: > { %4958 = sst [smem:[#allocation22_spill]] %s4116_s11  ;;  %s4211_s13 = sadd.s32 4294967295, %s4120_s12   ;;  %s4120_s12 = sphi %s4198_s12, %s4981_s12   ;;  %s4116_s11 = sphi %s4196_s11, %s4978_s11   ;;  %s4112_s10 = sphi %s4194_s10, %s4980_s10   ;;  %s4108_s30 = sphi %s4192_s30, %s4979_s30  }
   0xe   : > { %s4214_s14 = sadd.s32 1, %s4120_s12   ;;  %s57_s16 = sadd.s32 1, %s4116_s11 }
   0xf   : > { %s54_s15 = ssub.s32 %s4120_s12, %s4214_s14  ;;  %p64_p1 = scmp.ne.s32.totalorder %s4116_s11, %s4112_s10 }
  0x10   : > { %p55_p0 = scmp.eq.s32.totalorder %s54_s15, 0  ;;  %p65_p2 = scmp.eq.s32.totalorder %s4120_s12, 0 }
  0x11   : > { %p70_p3 = scmp.ne.s32.totalorder %s4112_s10, %s4108_s30  ;;  %p4949_p5 = scmp.eq.s32.totalorder %s4211_s13, 0 }
  0x12   : > { %s4224_s17 = scalar_select %p55_p0, %s4116_s11, %s57_s16  }
  0x13   : > { %p66_p4 = por %p65_p2, %p64_p1  ;;  %p3610_p6 = scmp.lt.s32.totalorder %s4120_s12, 2 }
  0x14   : > { %4959 = sst [smem:[#allocation23_spill]] %s4224_s17  ;;  %p4230_p7 = por %p4949_p5, %p70_p3 }
  0x15   : > { %s4235_s19 = sand.u32 1, %s4116_s11   ;;  %p4237_p8 = pnand %p3610_p6, %p66_p4 }
  0x16   : > { %s4960_s18 = scalar_select %p4230_p7, 1, 0 }
  0x17   : > { %s302_s21 = sand.u32 1, %s4120_s12   ;;  %s3153_s22 = sshll.u32 %s4235_s19, 6 }
  0x18   : > { %s3301_s23 = sshll.u32 %s4120_s12, 10  ;;  %s306_s24 = scalar_lea.vmem [#allocation7], %s3153_s22 }
  0x19   : > { %s313_s25 = sshll.u32 %s306_s24, 4  ;;  %s4962_s4 = sld [smem:[#allocation25_spill]]  ;;  %s4249_s25 = int_to_ptr.vmem [resolvable:$true] %s313_s25 }
  0x1a   : > { %s4251_s29 = scalar_lea.sflag [#allocation8], %s302_s21  ;;  %p4257_p10 = pneg %p4237_p8 }
  0x1f   : > { %s4247_s28 = scalar_lea.hbm %s4962_s4, %s3301_s23  ;;  %s3903_s23 = scalar_lea.hbm %s4962_s4, 2048 }
  0x20   : > { %s3898_s30 = scalar_lea.hbm %s4247_s28, 1024  ;;  %p3904_p13 = scmp.lt.u32.totalorder %s4247_s28, %s4962_s4 }
  0x21   : > { %p3899_p9 = scmp.ne.s32.totalorder %s4247_s28, %s3898_s30  ;;  %p3905_p0 = scmp.lt.u32.totalorder %s3903_s23, %s3898_s30 }
  0x22   : > { %p3907_p2 = scmp.lt.u32.totalorder %s3898_s30, %s4247_s28 }
  0x23   : > { %p3901_p11 = pnand %p4257_p10, %p3899_p9  ;;  %p3906_p1 = por %p3905_p0, %p3904_p13 }
  0x25   : > { %p3902_p12 = pneg %p3901_p11  ;;  %p3908_p3 = por %p3907_p2, %p3906_p1 }
  0x27   : > { %p3909_p4 = pnand %p3908_p3, %p3902_p12 }
  0x29   : > { %3912 = shalt.err (!%p3909_p4)
}
  0x2a   : > { %s3913_s21 = scalar_lea.vmem %s4249_s25, 1024  ;;  %s4122_s27 = smov [#allocation7]  }
  0x2b   : > { %p3914_p6 = scmp.ne.s32.totalorder %s4249_s25, %s3913_s21  ;;  %s3918_s16 = sshll.u32 %s4122_s27, 4  ;;  %s3919_s16 = int_to_ptr.vmem [resolvable:$false] %s3918_s16 }
  0x2c   : > { %s3920_s22 = scalar_lea.vmem %s3919_s16, 2048  ;;  %p3921_p5 = scmp.lt.s32.totalorder %s4249_s25, %s3919_s16 }
  0x2d   : > { %p3916_p9 = pnand %p3914_p6, %p4257_p10  ;;  %p3922_p7 = scmp.lt.s32.totalorder %s3920_s22, %s3913_s21 }
  0x2f   : > { %p3917_p11 = pneg %p3916_p9  ;;  %p3923_p13 = por %p3922_p7, %p3921_p5 }
  0x31   : > { %p3924_p0 = pnand %p3923_p13, %p3917_p11 }
  0x33   : > { %3927 = shalt.err (!%p3924_p0)
}
  0x34   : > { %s4951_s30 = smov 64   ;;  %s4952_s23 = smov 4  }
  0x35   : > { %3603 = dma.hbm_to_vmem [thread:$0]  (!%p4237_p8), %s4247_s28, 1024, %s4249_s25, %s4251_s29, %s4951_s30, %s4951_s30, %s4952_s23  }
  0x36   : > { %p3162_p5 = scmp.ge.s32.totalorder %s4120_s12, 1  ;;  %p377_p7 = scmp.lt.s32.totalorder %s4120_s12, 3 }
  0x37   : > { %s3578_s24 = smul.u32 192, %s4235_s19  ;;  %s4965_s2 = sld [smem:[#allocation24_spill]] }
  0x38   : > { %p4287_p12 = pnand %p3162_p5, %p377_p7  ;;  %s3579_s21 = smul.u32 3072, %s4120_s12 }
  0x39   : > { %s278_s4 = scalar_lea.vmem [#allocation4], %s3578_s24  ;;  %s275_s25 = scalar_lea.sflag [#allocation5], %s4235_s19 }
  0x3a   : > { %s4964_s26 = scalar_select %p4287_p12, 1, 0 }
  0x3b   : > { %s285_s17 = sshll.u32 %s278_s4, 4  ;;  %s4297_s17 = int_to_ptr.vmem [resolvable:$true] %s285_s17 }
  0x3d   : > { %s4295_s22 = scalar_lea.hbm %s4965_s2, %s3579_s21  ;;  %s3933_s27 = scalar_lea.hbm %s4965_s2, 6144 }
  0x3e   : > { %s3928_s28 = scalar_lea.hbm %s4295_s22, 3072  ;;  %p3934_p4 = scmp.lt.u32.totalorder %s4295_s22, %s4965_s2 }
  0x3f   : > { %p3929_p1 = scmp.ne.s32.totalorder %s4295_s22, %s3928_s28  ;;  %p3935_p6 = scmp.lt.u32.totalorder %s3933_s27, %s3928_s28 }
  0x40   : > { %p3937_p11 = scmp.lt.u32.totalorder %s3928_s28, %s4295_s22 }
  0x41   : > { %p3931_p2 = pnand %p3929_p1, %p4257_p10  ;;  %p3936_p9 = por %p3935_p6, %p3934_p4 }
  0x43   : > { %p3932_p3 = pneg %p3931_p2  ;;  %p3938_p13 = por %p3937_p11, %p3936_p9 }
  0x45   : > { %p3939_p0 = pnand %p3938_p13, %p3932_p3 }
  0x47   : > { %3942 = shalt.err (!%p3939_p0)
}
  0x48   : > { %s3943_s4 = scalar_lea.vmem %s4297_s17, 3072  ;;  %s4125_s30 = smov [#allocation4]  }
  0x49   : > { %p3944_p5 = scmp.ne.s32.totalorder %s4297_s17, %s3943_s4  ;;  %s3948_s23 = sshll.u32 %s4125_s30, 4  ;;  %s3949_s23 = int_to_ptr.vmem [resolvable:$false] %s3948_s23 }
  0x4a   : > { %s3950_s24 = scalar_lea.vmem %s3949_s23, 6144  ;;  %p3951_p2 = scmp.lt.s32.totalorder %s4297_s17, %s3949_s23 }
  0x4b   : > { %p3946_p7 = pnand %p3944_p5, %p4257_p10  ;;  %p3952_p12 = scmp.lt.s32.totalorder %s3950_s24, %s3943_s4 }
  0x4d   : > { %p3947_p1 = pneg %p3946_p7  ;;  %p3953_p4 = por %p3952_p12, %p3951_p2 }
  0x4f   : > { %p3954_p6 = pnand %p3953_p4, %p3947_p1 }
  0x51   : > { %3957 = shalt.err (!%p3954_p6)
}
  0x52   : > { %s4126_s28 = smov 192   ;;  %s4127_s27 = smov 12  }
  0x53   : > { %3600 = dma.hbm_to_vmem [thread:$0]  (!%p4237_p8), %s4295_s22, 3072, %s4297_s17, %s275_s25, %s4126_s28, %s4126_s28, %s4127_s27  }
  0x54   : > { %s3156_s21 = sshll.u32 %s4235_s19, 8  ;;  %s3302_s16 = sshll.u32 %s4120_s12, 12 }
  0x55   : > { %s4966_s5 = sld [smem:[#allocation26_spill]]  ;;  %s327_s24 = scalar_lea.vmem [#allocation9], %s3156_s21 }
  0x56   : > { %s334_s2 = sshll.u32 %s327_s24, 4  ;;  %s4334_s2 = int_to_ptr.vmem [resolvable:$true] %s334_s2 }
  0x5b   : > { %s4330_s23 = scalar_lea.hbm %s4966_s5, %s3302_s16  ;;  %s3963_s25 = scalar_lea.hbm %s4966_s5, 8192 }
  0x5c   : > { %s3958_s11 = scalar_lea.hbm %s4330_s23, 4096  ;;  %p3964_p11 = scmp.lt.u32.totalorder %s4330_s23, %s4966_s5 }
  0x5d   : > { %p3959_p12 = scmp.ne.s32.totalorder %s4330_s23, %s3958_s11  ;;  %p3965_p13 = scmp.lt.u32.totalorder %s3963_s25, %s3958_s11 }
  0x5e   : > { %p3967_p5 = scmp.lt.u32.totalorder %s3958_s11, %s4330_s23 }
  0x5f   : > { %p3961_p3 = pnand %p3959_p12, %p4257_p10  ;;  %p3966_p0 = por %p3965_p13, %p3964_p11 }
  0x61   : > { %p3962_p9 = pneg %p3961_p3  ;;  %p3968_p7 = por %p3967_p5, %p3966_p0 }
  0x63   : > { %p3969_p1 = pnand %p3968_p7, %p3962_p9 }
  0x65   : > { %3972 = shalt.err (!%p3969_p1)
}
  0x66   : > { %s3973_s4 = scalar_lea.vmem %s4334_s2, 4096  ;;  %s4128_s30 = smov [#allocation9]  }
  0x67   : > { %p3974_p2 = scmp.ne.s32.totalorder %s4334_s2, %s3973_s4  ;;  %s3978_s24 = sshll.u32 %s4128_s30, 4  ;;  %s3979_s24 = int_to_ptr.vmem [resolvable:$false] %s3978_s24 }
  0x68   : > { %s3980_s17 = scalar_lea.vmem %s3979_s24, 8192  ;;  %p3981_p12 = scmp.lt.s32.totalorder %s4334_s2, %s3979_s24 }
  0x69   : > { %p3976_p4 = pnand %p3974_p2, %p4257_p10  ;;  %p3982_p3 = scmp.lt.s32.totalorder %s3980_s17, %s3973_s4 }
  0x6b   : > { %p3977_p6 = pneg %p3976_p4  ;;  %p3983_p11 = por %p3982_p3, %p3981_p12 }
  0x6d   : > { %p3984_p13 = pnand %p3983_p11, %p3977_p6 }
  0x6f   : > { %3987 = shalt.err (!%p3984_p13)
}
  0x70   : > { %s4129_s11 = smov 256   ;;  %s4130_s22 = smov 16  }
  0x71   : > { %3606 = dma.hbm_to_vmem [thread:$0]  (!%p4237_p8), %s4330_s23, 4096, %s4334_s2, %s4251_s29, %s4129_s11, %s4129_s11, %s4130_s22  }
  0x72   : > { %s4967_s7 = sld [smem:[#allocation27_spill]]  ;;  %s355_s4 = scalar_lea.vmem [#allocation10], %s3156_s21 }
  0x73   : > { %s362_s30 = sshll.u32 %s355_s4, 4  ;;  %s352_s24 = scalar_lea.sflag [#allocation11], %s4235_s19  ;;  %s4367_s30 = int_to_ptr.vmem [resolvable:$true] %s362_s30 }
  0x78   : > { %s4363_s27 = scalar_lea.hbm %s4967_s7, %s3302_s16  ;;  %s3993_s29 = scalar_lea.hbm %s4967_s7, 8192 }
  0x79   : > { %s3988_s17 = scalar_lea.hbm %s4363_s27, 4096  ;;  %p3994_p7 = scmp.lt.u32.totalorder %s4363_s27, %s4967_s7 }
  0x7a   : > { %p3989_p9 = scmp.ne.s32.totalorder %s4363_s27, %s3988_s17  ;;  %p3995_p1 = scmp.lt.u32.totalorder %s3993_s29, %s3988_s17 }
  0x7b   : > { %p3997_p4 = scmp.lt.u32.totalorder %s3988_s17, %s4363_s27 }
  0x7c   : > { %p3991_p0 = pnand %p3989_p9, %p4257_p10  ;;  %p3996_p2 = por %p3995_p1, %p3994_p7 }
  0x7e   : > { %p3992_p5 = pneg %p3991_p0  ;;  %p3998_p6 = por %p3997_p4, %p3996_p2 }
  0x80   : > { %p3999_p12 = pnand %p3998_p6, %p3992_p5 }
  0x82   : > { %4002 = shalt.err (!%p3999_p12)
}
  0x83   : > { %s4003_s21 = scalar_lea.vmem %s4367_s30, 4096  ;;  %s4131_s11 = smov [#allocation10]  }
  0x84   : > { %p4004_p3 = scmp.ne.s32.totalorder %s4367_s30, %s4003_s21  ;;  %s4008_s22 = sshll.u32 %s4131_s11, 4  ;;  %s4009_s22 = int_to_ptr.vmem [resolvable:$false] %s4008_s22 }
  0x85   : > { %s4010_s25 = scalar_lea.vmem %s4009_s22, 8192  ;;  %p4011_p9 = scmp.lt.s32.totalorder %s4367_s30, %s4009_s22 }
  0x86   : > { %p4006_p11 = pnand %p4004_p3, %p4257_p10  ;;  %p4012_p0 = scmp.lt.s32.totalorder %s4010_s25, %s4003_s21 }
  0x88   : > { %p4007_p13 = pneg %p4006_p11  ;;  %p4013_p7 = por %p4012_p0, %p4011_p9 }
  0x8a   : > { %p4014_p1 = pnand %p4013_p7, %p4007_p13 }
  0x8c   : > { %4017 = shalt.err (!%p4014_p1)
}
  0x8d   : > { %s4968_s28 = smov 4   ;;  %s4969_s4 = smov 64  }
  0x8e   : > { %3609 = dma.hbm_to_vmem [thread:$0]  (!%p4237_p8), %s4363_s27, 4096, %s4367_s30, %s352_s24, %s4969_s4, %s4969_s4, %s4968_s28  }
  0x8f   : > { %p4970_p10 = scmp.ne.s32.totalorder %s4964_s26, 0 }
  0x90   : > { %s383_s15 = sand.u32 (!%p4970_p10), 1, %s4112_s10   ;;  %p4971_p5 = scmp.ne.s32.totalorder (!%p4970_p10), %s4960_s18, 0 }
  0x91   : > { %381 = sbr.rel (%p4970_p10) target bundleno = 4368 (0x1110), region = 52  ;;  %s384_s2 = scalar_lea.sflag (!%p4970_p10), [#allocation5], %s383_s15 }
  0x92   : > { %s3580_s17 = smul.u32 (!%p4970_p10), 192, %s383_s15 }
  0x94   : > { %s4399_s12 = scalar_lea.vmem (!%p4970_p10), [#allocation4], %s3580_s17 }
  0x98   : > { %4087 = dma.done.wait (%p4971_p5), %s384_s2, 3072  }
  0x99   : > { %4089 = vsyncadd (%p4971_p5), %s384_s2, 4294964224  ;;  %s392_s19 = sand.u32 1, %s4211_s13   ;;  %s3163_s20 = sshll.u32 %s383_s15, 6 }
  0x9a   : > { %s393_s27 = scalar_lea.sflag [#allocation8], %s392_s19  ;;  %s4406_s30 = scalar_lea.vmem [#allocation7], %s3163_s20 }
  0x9b   : > { %4091 = dma.done.wait (%p4971_p5), %s393_s27, 5120  }
  0x9c   : > { %4093 = vsyncadd (%p4971_p5), %s393_s27, 4294962176  ;;  %s3164_s26 = sshll.u32 %s383_s15, 8  ;;  %s411_s29 = scalar_lea.sflag [#allocation11], %s383_s15 }
  0x9d   : > { %s4412_s24 = scalar_lea.vmem [#allocation9], %s3164_s26  ;;  %s4414_s16 = scalar_lea.vmem [#allocation10], %s3164_s26 }
  0x9e   : > { %4095 = dma.done.wait (%p4971_p5), %s411_s29, 4096  }
  0x9f   : > { %4097 = vsyncadd (%p4971_p5), %s411_s29, 4294963200  ;;  %p469_p8 = scmp.lt.s32.totalorder %s4211_s13, 1  ;;  %s4132_s21 = smov [#allocation2]  }
  0xa0   : > { %s493_s11 = sshll.u32 %s4132_s21, 4  ;;  %s4018_s5 = scalar_lea.hbm %s4939_s0, 512  ;;  %s494_s11 = int_to_ptr.vmem [resolvable:$true] %s493_s11 }
  0xa1   : > { %s470_s23 = scalar_select %p469_p8, %s4211_s13, 1 }
  0xa2   : > { %p4019_p2 = scmp.ne.s32.totalorder %s4939_s0, %s4018_s5  ;;  %p4972_p4 = scmp.eq.s32.totalorder %s4211_s13, 0 }
  0xa3   : > { %s3581_s22 = smul.u32 3, %s470_s23  ;;  %s3166_s25 = sshll.u32 %s470_s23, 2 }
  0xa4   : > { %s4425_s15 = scalar_lea.vmem %s4945_s6, %s3166_s25  ;;  %s3167_s17 = sshll.u32 %s470_s23, 3 }
  0xa5   : > { %s4430_s18 = scalar_lea.vmem %s4942_s3, %s3581_s22  ;;  %s4435_s26 = scalar_lea.vmem %s4947_s8, %s3167_s17 }
  0xa6   : > { %p4020_p6 = pnand %p4019_p2, %p4972_p4  ;;  %p4024_p3 = scmp.lt.u32.totalorder %s4018_s5, %s4939_s0 }
  0xa8   : > { %p4021_p12 = pneg %p4020_p6 }
  0xaa   : > { %p4026_p11 = pnand %p4024_p3, %p4021_p12 }
  0xac   : > { %4029 = shalt.err (!%p4026_p11)  }
  0xad   : > { %s4030_s25 = scalar_lea.vmem %s494_s11, 512  ;;  %p4973_p9 = pmov %p4972_p4 }
  0xae   : > { %p4031_p13 = scmp.ne.s32.totalorder %s494_s11, %s4030_s25  ;;  %p4037_p1 = scmp.lt.s32.totalorder %s494_s11, %s494_s11 }
  0xaf   : > { %p4038_p10 = scmp.lt.s32.totalorder %s4030_s25, %s4030_s25 }
  0xb0   : > { %p4032_p0 = pnand %p4031_p13, %p4973_p9 }
  0xb1   : > { %p4039_p5 = por %p4038_p10, %p4037_p1 }
  0xb2   : > { %p4033_p7 = pneg %p4032_p0 }
  0xb4   : > { %p4040_p8 = pnand %p4039_p5, %p4033_p7 }
  0xb6   : > { %4043 = shalt.err (!%p4040_p8)  }
  0xb7   : > { %p4974_p2 = pmov %p4972_p4 }
  0xb9   : > { %3591 = dma.hbm_to_vmem [thread:$0]  (%p4974_p2), %s4939_s0, 512, %s494_s11, [#allocation3] }
  0xba   : > { %p4975_p4 = pmov %p4974_p2 }
  0xbb   : > { %p4976_p6 = pmov %p4974_p2 }
  0xbc   : > { %4099 = dma.done.wait (%p4975_p4), [#allocation3], 512 }
  0xbd   : > { %4101 = vsyncadd (%p4976_p6), [#allocation3], 4294966784  ;;  %v500_v0 = vld [vmem:[#allocation2] sm:$0xff]  ;;  %v502_v1 = vld [vmem:[#allocation2 + $0x10] sm:$0xff]  ;;  %v4133_v39 = vmov 0   ;;  %vm4135_vm0 = vmmov 0  }
  0xbe   : > { %v501_v2 = vld [vmem:[#allocation2 + $0x8] sm:$0xff]  ;;  %512 = vadd.xlane.f32.xlu0 %v500_v0  ;;  %516 = vadd.xlane.f32.xlu1 %v502_v1  ;;  %v503_v3 = vld [vmem:[#allocation2 + $0x18] sm:$0xff]  ;;  %v3662_v4 = vld [vmem:[%s4399_s12 + $0x4] ss:$12 sps:$4 sm:$0xff]   ;;  %vm864_vm1 = vcmask 261120   ;;  %vm959_vm2 = vcmask 130048  }
  0xbf   : > { %v3664_v5 = vld [vmem:[%s4399_s12] ss:$12 sps:$4 sm:$0xff]   ;;  %v3665_v6 = vld [vmem:[%s4399_s12 + $0x1c] ss:$12 sps:$4 sm:$0xff]   ;;  %752 = vmatprep.subr.bf16.mxu0 %v3662_v4  ;;  %v3668_v24 = vld [vmem:[%s4399_s12 + $0x18] ss:$12 sps:$4 sm:$0xff]   ;;  %784 = vmatprep.mubr.bf16.mxu0 %v4133_v39 }
  0xc0   : > { %v3667_v7 = vld [vmem:[%s4399_s12 + $0x8] ss:$12 sps:$4 sm:$0xff]   ;;  %753 = vmatpush1.bf16.msra.mxu0 %v3664_v5  ;;  %v3671_v26 = vld [vmem:[%s4399_s12 + $0x20] ss:$12 sps:$4 sm:$0xff]   ;;  %v3672_v27 = vld [vmem:[%s4399_s12 + $0x30] ss:$12 sps:$4 sm:$0xff]  }
  0xc1   : > { %3418 = vmatprep.subr.bf16.mxu1 %v3667_v7  ;;  %754 = vmatprep.subr.bf16.mxu0 %v3665_v6  ;;  %v3669_v25 = vld [vmem:[%s4399_s12 + $0x34] ss:$12 sps:$4 sm:$0xff]   ;;  %v3673_v28 = vld [vmem:[%s4399_s12 + $0x4c] ss:$12 sps:$4 sm:$0xff]   ;;  %v3677_v31 = vld [vmem:[%s4399_s12 + $0x64] ss:$12 sps:$4 sm:$0xff]  }
  0xc2   : > { %514 = vadd.xlane.f32.xlu0 %v501_v2  ;;  %518 = vadd.xlane.f32.xlu1 %v503_v3  ;;  %v3675_v29 = vld [vmem:[%s4399_s12 + $0x38] ss:$12 sps:$4 sm:$0xff]   ;;  %v3676_v30 = vld [vmem:[%s4399_s12 + $0x48] ss:$12 sps:$4 sm:$0xff]   ;;  %v3679_v32 = vld [vmem:[%s4399_s12 + $0x50] ss:$12 sps:$4 sm:$0xff]  }
  0xc3   : > { %3419 = vmatpush3.bf16.msra.mxu1 %v3667_v7  ;;  %v3680_v33 = vld [vmem:[%s4399_s12 + $0x60] ss:$12 sps:$4 sm:$0xff]   ;;  %v3681_v34 = vld [vmem:[%s4399_s12 + $0x7c] ss:$12 sps:$4 sm:$0xff]   ;;  %v3684_v36 = vld [vmem:[%s4399_s12 + $0x78] ss:$12 sps:$4 sm:$0xff]  }
  0xc4   : > { %755 = vmatpush1.bf16.msra.mxu0 %v3668_v24  ;;  %3420 = vmatprep.subr.bf16.mxu1 %v3671_v26  ;;  %v3683_v35 = vld [vmem:[%s4399_s12 + $0x68] ss:$12 sps:$4 sm:$0xff]   ;;  %v3687_v38 = vld [vmem:[%s4399_s12 + $0x80] ss:$12 sps:$4 sm:$0xff]   ;;  %v3688_v40 = vld [vmem:[%s4399_s12 + $0x90] ss:$12 sps:$4 sm:$0xff]  }
  0xc5   : > { %756 = vmatprep.subr.bf16.mxu0 %v3669_v25  ;;  %v3685_v37 = vld [vmem:[%s4399_s12 + $0x94] ss:$12 sps:$4 sm:$0xff]   ;;  %v3689_v41 = vld [vmem:[%s4399_s12 + $0xac] ss:$12 sps:$4 sm:$0xff]   ;;  %v3693_v44 = vld [vmem:[%s4399_s12 + $0xb0] ss:$12 sps:$4 sm:$0xff]  }
  0xc6   : > { %v3691_v42 = vld [vmem:[%s4399_s12 + $0x98] ss:$12 sps:$4 sm:$0xff]   ;;  %v3692_v43 = vld [vmem:[%s4399_s12 + $0xa8] ss:$12 sps:$4 sm:$0xff]   ;;  %v3169_v59 = vld [vmem:[%s4435_s26] ss:$0 sm:$0xff] }
  0xc7   : > { %3421 = vmatpush3.bf16.msra.mxu1 %v3671_v26  ;;  %s4136_s2 = smov 96   ;;  %s4137_s19 = smov 64  }
  0xc8   : > { %757 = vmatpush1.bf16.msra.mxu0 %v3672_v27  ;;  %3422 = vmatprep.subr.bf16.mxu1 %v3675_v29  ;;  %p3295_p12 = scmp.ne.s32.totalorder %s4211_s13, 1 }
  0xc9   : > { %758 = vmatprep.subr.bf16.mxu0 %v3673_v28 }
  0xcb   : > { %3423 = vmatpush3.bf16.msra.mxu1 %v3675_v29 }
  0xcc   : > { %759 = vmatpush1.bf16.msra.mxu0 %v3676_v30  ;;  %3424 = vmatprep.subr.bf16.mxu1 %v3679_v32 }
  0xcd   : > { %760 = vmatprep.subr.bf16.mxu0 %v3677_v31 }
  0xcf   : > { %3425 = vmatpush3.bf16.msra.mxu1 %v3679_v32 }
  0xd0   : > { %761 = vmatpush1.bf16.msra.mxu0 %v3680_v33  ;;  %3426 = vmatprep.subr.bf16.mxu1 %v3683_v35 }
  0xd1   : > { %762 = vmatprep.subr.bf16.mxu0 %v3681_v34 }
  0xd3   : > { %3427 = vmatpush3.bf16.msra.mxu1 %v3683_v35 }
  0xd4   : > { %763 = vmatpush1.bf16.msra.mxu0 %v3684_v36  ;;  %3428 = vmatprep.subr.bf16.mxu1 %v3687_v38 }
  0xd5   : > { %764 = vmatprep.subr.bf16.mxu0 %v3685_v37 }
  0xd7   : > { %3429 = vmatpush3.bf16.msra.mxu1 %v3687_v38 }
  0xd8   : > { %765 = vmatpush1.bf16.msra.mxu0 %v3688_v40  ;;  %3430 = vmatprep.subr.bf16.mxu1 %v3691_v42 }
  0xd9   : > { %766 = vmatprep.subr.bf16.mxu0 %v3689_v41 }
  0xdb   : > { %3431 = vmatpush3.bf16.msra.mxu1 %v3691_v42 }
  0xdc   : > { %767 = vmatpush1.bf16.msra.mxu0 %v3692_v43  ;;  %3432 = vmatprep.subr.bf16.mxu1 %v3693_v44 }
  0xdf   : > { %3433 = vmatpush3.bf16.msra.mxu1 %v3693_v44 }
 0x14b   : > { %v513_v8 = vpop.xlane.xlu0 %512  ;;  %v517_v9 = vpop.xlane.xlu1 %516 }
 0x14c   : > { %v521_v10 = vmul.f32 0.0078125, %v513_v8  ;;  %v523_v11 = vmul.f32 0.0078125, %v517_v9 }
 0x14e   : > { %v4463_v12 = vsub.f32 %v500_v0, %v521_v10  ;;  %v4465_v13 = vsub.f32 %v502_v1, %v523_v11  ;;  %v3170_v0 = vld [vmem:[%s4435_s26 + $0x1] ss:$0 sm:$0xff] }
 0x14f   : > { %v515_v14 = vpop.xlane.xlu0 %514  ;;  %v519_v15 = vpop.xlane.xlu1 %518 }
 0x150   : > { %v522_v16 = vmul.f32 0.0078125, %v515_v14  ;;  %v529_v17 = vmul.f32 %v4463_v12, %v4463_v12  ;;  %v524_v18 = vmul.f32 0.0078125, %v519_v15  ;;  %v531_v21 = vmul.f32 %v4465_v13, %v4465_v13 }
 0x151   : > { %v609_v14 = vlaneseq }
 0x152   : > { %v4469_v19 = vsub.f32 %v501_v2, %v522_v16  ;;  %533 = vadd.xlane.f32.xlu0 %v529_v17  ;;  %v4471_v20 = vsub.f32 %v503_v3, %v524_v18  ;;  %v607_v17 = vld [vmem:[%s4430_s18] sm:$0x7]  ;;  %s4138_s18 = smov 32  }
 0x153   : > { %v4513_v15 = vshrl.u32 %v609_v14, 7 }
 0x154   : > { %v530_v22 = vmul.f32 %v4469_v19, %v4469_v19  ;;  %v532_v23 = vmul.f32 %v4471_v20, %v4471_v20 }
 0x155   : > { %v611_v16 = vsub.s32 0, %v4513_v15  ;;  %v615_v18 = vsub.s32 1, %v4513_v15 }
 0x156   : > { %537 = vadd.xlane.f32.xlu0 %v531_v21  ;;  %535 = vadd.xlane.f32.xlu1 %v530_v22 }
 0x157   : > { %v616_v22 = vrot.slane %v607_v17, %v615_v18 }
 0x15a   : > { %539 = vadd.xlane.f32.xlu1 %v532_v23 }
 0x1df   : > { %v534_v45 = vpop.xlane.xlu0 %533 }
 0x1e0   : > { %v541_v46 = vmul.f32 0.0078125, %v534_v45 }
 0x1e2   : > { %v545_v47 = vadd.f32 1e-05, %v541_v46 }
 0x1e3   : > { %v536_v48 = vpop.xlane.xlu1 %535  ;;  %v538_v49 = vpop.xlane.xlu0 %537 }
 0x1e4   : > { %3782 = vrsqrt.f32 %v545_v47  ;;  %v542_v50 = vmul.f32 0.0078125, %v536_v48  ;;  %v543_v51 = vmul.f32 0.0078125, %v538_v49 }
 0x1e6   : > { %v546_v52 = vadd.f32 1e-05, %v542_v50  ;;  %v547_v53 = vadd.f32 1e-05, %v543_v51 }
 0x1e7   : > { %v540_v54 = vpop.xlane.xlu1 %539 }
 0x1e8   : > { %3784 = vrsqrt.f32 %v546_v52  ;;  %v544_v55 = vmul.f32 0.0078125, %v540_v54 }
 0x1e9   : > { %3786 = vrsqrt.f32 %v547_v53 }
 0x1ea   : > { %v548_v56 = vadd.f32 1e-05, %v544_v55 }
 0x1ec   : > { %3788 = vrsqrt.f32 %v548_v56 }
 0x1ee   : > { %v3783_v57 = vpop.eup %3782 }
 0x1ef   : > { %v553_v58 = vmul.f32 %v3783_v57, %v4463_v12 }
 0x1f1   : > { %v561_v63 = vmul.f32 %v3169_v59, %v553_v58 }
 0x1f2   : > { %v3785_v60 = vpop.eup %3784 }
 0x1f3   : > { %v3787_v61 = vpop.eup %3786  ;;  %v554_v62 = vmul.f32 %v3785_v60, %v4469_v19  ;;  %v569_v4 = vadd.f32 %v3170_v0, %v561_v63  ;;  %v612_v19 = vrot.slane %v607_v17, %v611_v16 }
 0x1f4   : > { %v555_v1 = vmul.f32 %v3787_v61, %v4465_v13  ;;  %v4134_v13 = vmov 0.0  }
 0x1f5   : > { %v562_v2 = vmul.f32 %v3169_v59, %v554_v62  ;;  %3438 = vmatprep.subr.bf16.mxu1 %v4134_v13  ;;  %3444 = vmatprep.subr.bf16.mxu0 %v4134_v13 }
 0x1f6   : > { %v3789_v3 = vpop.eup %3788  ;;  %v563_v7 = vmul.f32 %v3169_v59, %v555_v1 }
 0x1f7   : > { %v570_v5 = vadd.f32 %v3170_v0, %v562_v2  ;;  %v556_v6 = vmul.f32 %v3789_v3, %v4471_v20  ;;  %v619_v20 = vsub.s32 2, %v4513_v15 }
 0x1f8   : > { %v571_v10 = vadd.f32 %v3170_v0, %v563_v7 }
 0x1f9   : > { %v573_v8 = vpack.c.bf16 %v570_v5, %v569_v4  ;;  %v564_v9 = vmul.f32 %v3169_v59, %v556_v6  ;;  %v620_v28 = vrot.slane %v607_v17, %v619_v20  ;;  %v4564_v4 = vld [vmem:[%s4940_s1 + $0x8] sm:$0xff] }
 0x1fb   : > { %785 = vmatmul.mubr.bf16.vlgmr.msra.gmra.mrb[0].mxu0 %v573_v8  ;;  %3434 = vmatprep.mubr.bf16.mxu1 %v573_v8  ;;  %v572_v11 = vadd.f32 %v3170_v0, %v564_v9  ;;  %v4558_v0 = vld [vmem:[%s4940_s1] sm:$0xff] }
 0x1fc   : > { %794 = vmatprep.mubr.bf16.mxu0 %v4133_v39 }
 0x1fd   : > { %v574_v12 = vpack.c.bf16 %v572_v11, %v571_v10 }
 0x1ff   : > { %3435 = vmatmul.mubr.bf16.vlgmr.msra.gmra.mrb[0].mxu1 %v574_v12 }
 0x200   : > { %3440 = vmatprep.mubr.msk.bf16.mxu1 %vm4135_vm0, %v4134_v13 }
 0x203   : > { %795 = vmatmul.mubr.bf16.gmra.mrb[4].mxu0 %v574_v12 }
 0x204   : > { %3446 = vmatprep.mubr.msk.bf16.mxu0 %vm4135_vm0, %v4134_v13 }
 0x2ce   : > { %v786_v21 = vpop.f32.mrb[0].mxu0 }
 0x2cf   : > { %v787_v23 = vadd.f32 %v786_v21, %v612_v19  ;;  %v788_v24 = vpop.f32.mrb[1].mxu0 }
 0x2d0   : > { %v790_v25 = vpop.f32.mrb[2].mxu0  ;;  %v789_v29 = vadd.f32 %v788_v24, %v616_v22 }
 0x2d1   : > { %v791_v26 = vadd.f32 %v790_v25, %v612_v19  ;;  %v792_v27 = vpop.f32.mrb[3].mxu0  ;;  %v854_v32 = vmul.f32 0.17677669, %v787_v23 }
 0x2d2   : > { %v793_v30 = vadd.f32 %v792_v27, %v616_v22  ;;  %v3436_v31 = vpop.f32.mrb[0].mxu1 }
 0x2d3   : > { %v855_v33 = vmul.f32 0.17677669, %v791_v26  ;;  %v839_v34 = vpop.f32.mrb[1].mxu1  ;;  %v848_v38 = vadd.f32 %v3436_v31, %v620_v28 }
 0x2d4   : > { %v4525_v35 = vpack.c.bf16 %v793_v30, %v789_v29  ;;  %v3437_v36 = vpop.f32.mrb[2].mxu1  ;;  %v840_v42 = vadd.f32 %v839_v34, %v620_v28 }
 0x2d5   : > { %v4527_v37 = vpack.c.bf16 %v855_v33, %v854_v32  ;;  %v851_v40 = vadd.f32 %v3437_v36, %v620_v28  ;;  %v842_v41 = vpop.f32.mrb[3].mxu1 }
 0x2d6   : > { %v843_v43 = vadd.f32 %v842_v41, %v620_v28  ;;  %v796_v44 = vpop.f32.mrb[4].mxu0  ;;  %v869_v45 = vsel %vm864_vm1, %v4525_v35, 0 }
 0x2d7   : > { %v4531_v46 = vpack.c.bf16 %v851_v40, %v848_v38  ;;  %v797_v47 = vadd.f32 %v796_v44, %v612_v19  ;;  %v798_v48 = vpop.f32.mrb[5].mxu0  ;;  %3439 = vmatpush3.bf16.xpose.msra.mxu1 %v869_v45 }
 0x2d8   : > { %v4533_v49 = vpack.c.bf16 %v843_v43, %v840_v42  ;;  %v800_v50 = vpop.f32.mrb[6].mxu0  ;;  %3450 = vmatprep.subr.bf16.mxu1 %v4134_v13  ;;  %v799_v53 = vadd.f32 %v798_v48, %v616_v22 }
 0x2d9   : > { %v801_v51 = vadd.f32 %v800_v50, %v612_v19  ;;  %v802_v52 = vpop.f32.mrb[7].mxu0  ;;  %v856_v55 = vmul.f32 0.17677669, %v797_v47 }
 0x2da   : > { %v803_v54 = vadd.f32 %v802_v52, %v616_v22 }
 0x2db   : > { %v857_v56 = vmul.f32 0.17677669, %v801_v51 }
 0x2dc   : > { %v4536_v57 = vpack.c.bf16 %v803_v54, %v799_v53 }
 0x2dd   : > { %v4538_v58 = vpack.c.bf16 %v857_v56, %v856_v55 }
 0x2de   : > { %3441 = vmatmul.mubr.msk.bf16.vlgmr.msra.gmra.mrb[4].mxu1 %vm864_vm1, %v4527_v37  ;;  %v916_v59 = vsel %vm864_vm1, %v4536_v57, 0 }
 0x2df   : > { %3445 = vmatpush3.bf16.xpose.msra.mxu0 %v916_v59  ;;  %3451 = vmatpush3.bf16.msra.mxu1 %v4533_v49 }
 0x2e0   : > { %3456 = vmatprep.subr.bf16.mxu0 %v4134_v13  ;;  %3452 = vmatprep.mubr.msk.bf16.mxu1 %vm4135_vm0, %v4134_v13 }
 0x2e1   : > { %3462 = vmatprep.subr.bf16.mxu1 %v4134_v13 }
 0x2e6   : > { %3447 = vmatmul.mubr.msk.bf16.vlgmr.msra.gmra.mrb[8].mxu0 %vm864_vm1, %v4538_v58 }
 0x2e7   : > { %3457 = vmatpush3.bf16.msra.mxu0 %v4531_v46  ;;  %3458 = vmatprep.mubr.msk.bf16.mxu0 %vm4135_vm0, %v4134_v13 }
 0x2e8   : > { %3468 = vmatprep.subr.bf16.mxu0 %v4134_v13 }
 0x3b1   : > { %v905_v60 = vpop.f32.mrb[4].mxu1 }
 0x3b2   : > { %v3442_v61 = vpop.f32.mrb[5].mxu1  ;;  %v906_v26 = vadd.f32 %v905_v60, %v4558_v0 }
 0x3b3   : > { %v908_v62 = vpop.f32.mrb[6].mxu1 }
 0x3b4   : > { %v3443_v63 = vpop.f32.mrb[7].mxu1  ;;  %v909_v25 = vadd.f32 %v908_v62, %v4564_v4  ;;  %v960_v28 = vsel %vm959_vm2, %v906_v26, -inf }
 0x3b6   : > { %v963_v27 = vsel %vm959_vm2, %v909_v25, -inf }
 0x3b9   : > { %v952_v1 = vpop.f32.mrb[8].mxu0 }
 0x3ba   : > { %v953_v2 = vadd.f32 %v952_v1, %v4558_v0  ;;  %v3448_v3 = vpop.f32.mrb[9].mxu0 }
 0x3bb   : > { %v955_v5 = vpop.f32.mrb[10].mxu0 }
 0x3bc   : > { %v956_v6 = vadd.f32 %v955_v5, %v4564_v4  ;;  %v3449_v7 = vpop.f32.mrb[11].mxu0  ;;  %v966_v8 = vsel %vm959_vm2, %v953_v2, -inf }
 0x3bd   : > { %967 = vmax.xlane.f32.xlu0 %v966_v8 }
 0x3be   : > { %v969_v9 = vsel %vm959_vm2, %v956_v6, -inf }
 0x3bf   : > { %970 = vmax.xlane.f32.xlu1 %v969_v9 }
 0x44a   : > { %v968_v10 = vpop.xlane.xlu0 %967 }
 0x44b   : > { %v974_v11 = vsub.f32 %v953_v2, %v968_v10 }
 0x44c   : > { %v971_v12 = vpop.xlane.xlu1 %970 }
 0x44d   : > { %v980_v14 = vmul.f32 1.442695, %v974_v11  ;;  %v975_v17 = vsub.f32 %v956_v6, %v971_v12 }
 0x44f   : > { %3790 = vpow2.f32 %v980_v14  ;;  %v982_v19 = vmul.f32 1.442695, %v975_v17 }
 0x451   : > { %3792 = vpow2.f32 %v982_v19 }
 0x459   : > { %v3791_v21 = vpop.eup %3790 }
 0x45a   : > { %v990_v22 = vsel %vm959_vm2, %v3791_v21, 0.0 }
 0x45b   : > { %v3793_v23 = vpop.eup %3792  ;;  %991 = vadd.xlane.f32.xlu0 %v990_v22 }
 0x45c   : > { %v993_v24 = vsel %vm959_vm2, %v3793_v23, 0.0 }
 0x45d   : > { %994 = vadd.xlane.f32.xlu1 %v993_v24 }
 0x46e   : > { %1154 = vrot.lane.b32.xlu1 %v4538_v58, %s4136_s2 }
 0x471   : > { %1157 = vrot.lane.b32.xlu0 %v4536_v57, %s4136_s2 }
 0x490   : > { %964 = vmax.xlane.f32.xlu0 %v963_v27 }
 0x492   : > { %961 = vmax.xlane.f32.xlu1 %v960_v28 }
 0x4e8   : > { %v992_v29 = vpop.xlane.xlu0 %991 }
 0x4e9   : > { %3794 = vrcp.f32 %v992_v29 }
 0x4ea   : > { %v995_v30 = vpop.xlane.xlu1 %994 }
 0x4eb   : > { %3796 = vrcp.f32 %v995_v30 }
 0x4ec   : > { %v1158_v36 = vpop.permute.xlu0 %1157 }
 0x4ed   : > { %v1163_v40 = vsel %vm864_vm1, %v1158_v36, 0 }
 0x4ee   : > { %v1155_v41 = vpop.permute.xlu1 %1154 }
 0x4f3   : > { %v3795_v31 = vpop.eup %3794 }
 0x4f4   : > { %v1001_v33 = vmul.f32 %v3795_v31, %v3791_v21 }
 0x4f5   : > { %v3797_v32 = vpop.eup %3796 }
 0x4f6   : > { %v1003_v34 = vmul.f32 %v3797_v32, %v3793_v23 }
 0x4f8   : > { %v1005_v38 = vpack.c.bf16 %v1003_v34, %v1001_v33 }
 0x4fa   : > { %3459 = vmatmul.mubr.msk.bf16.vlgmr.msra.gmra.mrb[12].mxu0 %vm959_vm2, %v1005_v38 }
 0x4fb   : > { %3469 = vmatpush3.bf16.xpose.msra.mxu0 %v1163_v40  ;;  %3470 = vmatprep.mubr.msk.bf16.mxu0 %vm4135_vm0, %v4134_v13 }
 0x4fc   : > { %3480 = vmatprep.subr.bf16.mxu0 %v4134_v13 }
 0x502   : > { %3471 = vmatmul.mubr.msk.bf16.vlgmr.msra.gmra.mrb[16].mxu0 %vm864_vm1, %v1155_v41 }
 0x503   : > { %3482 = vmatprep.mubr.msk.bf16.mxu0 %vm4135_vm0, %v4134_v13 }
 0x51d   : > { %v965_v42 = vpop.xlane.xlu0 %964 }
 0x51e   : > { %v973_v43 = vsub.f32 %v909_v25, %v965_v42 }
 0x51f   : > { %v962_v44 = vpop.xlane.xlu1 %961 }
 0x520   : > { %v978_v45 = vmul.f32 1.442695, %v973_v43  ;;  %v972_v47 = vsub.f32 %v906_v26, %v962_v44 }
 0x522   : > { %3798 = vpow2.f32 %v978_v45  ;;  %v976_v48 = vmul.f32 1.442695, %v972_v47 }
 0x524   : > { %3800 = vpow2.f32 %v976_v48 }
 0x52c   : > { %v3799_v50 = vpop.eup %3798 }
 0x52d   : > { %v987_v51 = vsel %vm959_vm2, %v3799_v50, 0.0 }
 0x52e   : > { %v3801_v52 = vpop.eup %3800  ;;  %988 = vadd.xlane.f32.xlu1 %v987_v51 }
 0x52f   : > { %v984_v53 = vsel %vm959_vm2, %v3801_v52, 0.0 }
 0x530   : > { %985 = vadd.xlane.f32.xlu0 %v984_v53 }
 0x53f   : > { %1101 = vrot.lane.b32.xlu1 %v4527_v37, %s4136_s2 }
 0x546   : > { %1104 = vrot.lane.b32.xlu0 %v4525_v35, %s4136_s2 }
 0x5bb   : > { %v989_v54 = vpop.xlane.xlu1 %988 }
 0x5bc   : > { %3802 = vrcp.f32 %v989_v54 }
 0x5bd   : > { %v986_v55 = vpop.xlane.xlu0 %985 }
 0x5be   : > { %3804 = vrcp.f32 %v986_v55 }
 0x5bf   : > { %v1102_v8 = vpop.permute.xlu1 %1101 }
 0x5c1   : > { %v1105_v62 = vpop.permute.xlu0 %1104 }
 0x5c2   : > { %v1110_v1 = vsel %vm864_vm1, %v1105_v62, 0 }
 0x5c6   : > { %v3803_v56 = vpop.eup %3802 }
 0x5c7   : > { %v999_v60 = vmul.f32 %v3803_v56, %v3799_v50 }
 0x5c8   : > { %v3805_v59 = vpop.eup %3804 }
 0x5c9   : > { %v997_v61 = vmul.f32 %v3805_v59, %v3801_v52 }
 0x5cb   : > { %v1004_v63 = vpack.c.bf16 %v999_v60, %v997_v61 }
 0x5cd   : > { %3453 = vmatmul.mubr.msk.bf16.vlgmr.msra.gmra.mrb[8].mxu1 %vm959_vm2, %v1004_v63  ;;  %v4595_v2 = vpop.f32.mrb[12].mxu0 }
 0x5ce   : > { %3463 = vmatpush3.bf16.xpose.msra.mxu1 %v1110_v1  ;;  %v3460_v3 = vpop.f32.mrb[13].mxu0  ;;  %3464 = vmatprep.mubr.msk.bf16.mxu1 %vm4135_vm0, %v4134_v13 }
 0x5cf   : > { %v4599_v5 = vpop.f32.mrb[14].mxu0  ;;  %3474 = vmatprep.subr.bf16.mxu1 %v4134_v13 }
 0x5d0   : > { %v1095_v6 = vpack.c.bf16 %v4599_v5, %v4595_v2  ;;  %v3461_v7 = vpop.f32.mrb[15].mxu0 }
 0x5d5   : > { %3465 = vmatmul.mubr.msk.bf16.vlgmr.msra.gmra.mrb[12].mxu1 %vm864_vm1, %v1102_v8  ;;  %v1199_v9 = vpop.f32.mrb[16].mxu0 }
 0x5d6   : > { %v1200_v10 = vadd.f32 %v1199_v9, %v4558_v0  ;;  %v3472_v11 = vpop.f32.mrb[17].mxu0  ;;  %3476 = vmatprep.mubr.msk.bf16.mxu1 %vm4135_vm0, %v4134_v13 }
 0x5d7   : > { %v1202_v12 = vpop.f32.mrb[18].mxu0 }
 0x5d8   : > { %v1203_v14 = vadd.f32 %v1202_v12, %v4564_v4  ;;  %v3473_v17 = vpop.f32.mrb[19].mxu0  ;;  %v1212_v19 = vsel %vm959_vm2, %v1200_v10, -inf }
 0x5d9   : > { %1213 = vmax.xlane.f32.xlu1 %v1212_v19 }
 0x5da   : > { %v1215_v21 = vsel %vm959_vm2, %v1203_v14, -inf }
 0x5db   : > { %1216 = vmax.xlane.f32.xlu0 %v1215_v21 }
 0x5ea   : > { %1490 = vrot.lane.b32.xlu1 %v4525_v35, %s4137_s19 }
 0x666   : > { %v1214_v22 = vpop.xlane.xlu1 %1213 }
 0x667   : > { %v1220_v23 = vsub.f32 %v1200_v10, %v1214_v22 }
 0x668   : > { %v1217_v24 = vpop.xlane.xlu0 %1216 }
 0x669   : > { %v1226_v25 = vmul.f32 1.442695, %v1220_v23  ;;  %v1221_v26 = vsub.f32 %v1203_v14, %v1217_v24 }
 0x66a   : > { %v1491_v50 = vpop.permute.xlu1 %1490 }
 0x66b   : > { %3806 = vpow2.f32 %v1226_v25  ;;  %v1228_v27 = vmul.f32 1.442695, %v1221_v26  ;;  %v1496_v62 = vsel %vm864_vm1, %v1491_v50, 0 }
 0x66d   : > { %3808 = vpow2.f32 %v1228_v27 }
 0x675   : > { %v3807_v28 = vpop.eup %3806 }
 0x676   : > { %v1236_v29 = vsel %vm959_vm2, %v3807_v28, 0.0 }
 0x677   : > { %v3809_v30 = vpop.eup %3808  ;;  %1237 = vadd.xlane.f32.xlu0 %v1236_v29 }
 0x678   : > { %v1239_v31 = vsel %vm959_vm2, %v3809_v30, 0.0 }
 0x679   : > { %1240 = vadd.xlane.f32.xlu1 %v1239_v31 }
 0x68a   : > { %1488 = vrot.lane.b32.xlu1 %v4527_v37, %s4137_s19 }
 0x68d   : > { %1301 = vrot.lane.b32.xlu0 %v4531_v46, %s4136_s2 }
 0x68e   : > { %1541 = vrot.lane.b32.xlu1 %v4536_v57, %s4137_s19 }
 0x691   : > { %1539 = vrot.lane.b32.xlu0 %v4538_v58, %s4137_s19 }
 0x6a0   : > { %v4623_v32 = vpop.f32.mrb[8].mxu1 }
 0x6a1   : > { %v3454_v33 = vpop.f32.mrb[9].mxu1 }
 0x6a2   : > { %v4625_v34 = vpop.f32.mrb[10].mxu1 }
 0x6a3   : > { %v1094_v36 = vpack.c.bf16 %v4625_v34, %v4623_v32  ;;  %v3455_v38 = vpop.f32.mrb[11].mxu1 }
 0x6a8   : > { %v1146_v40 = vpop.f32.mrb[12].mxu1 }
 0x6a9   : > { %v3466_v41 = vpop.f32.mrb[13].mxu1  ;;  %v1147_v45 = vadd.f32 %v1146_v40, %v4558_v0 }
 0x6aa   : > { %v1149_v42 = vpop.f32.mrb[14].mxu1 }
 0x6ab   : > { %v1150_v43 = vadd.f32 %v1149_v42, %v4564_v4  ;;  %v3467_v44 = vpop.f32.mrb[15].mxu1  ;;  %v1206_v48 = vsel %vm959_vm2, %v1147_v45, -inf }
 0x6ad   : > { %v1209_v47 = vsel %vm959_vm2, %v1150_v43, -inf }
 0x6b0   : > { %1210 = vmax.xlane.f32.xlu0 %v1209_v47 }
 0x6b2   : > { %1207 = vmax.xlane.f32.xlu1 %v1206_v48 }
 0x6c3   : > { %1253 = vrot.lane.b32.xlu1 %v4533_v49, %s4136_s2 }
 0x704   : > { %v1238_v51 = vpop.xlane.xlu0 %1237 }
 0x705   : > { %3810 = vrcp.f32 %v1238_v51 }
 0x706   : > { %v1241_v52 = vpop.xlane.xlu1 %1240 }
 0x707   : > { %3812 = vrcp.f32 %v1241_v52 }
 0x708   : > { %v1302_v53 = vpop.permute.xlu0 %1301 }
 0x709   : > { %3481 = vmatpush3.bf16.msra.mxu0 %v1302_v53 }
 0x70a   : > { %3502 = vmatprep.subr.bf16.mxu0 %v4134_v13  ;;  %v1489_v61 = vpop.permute.xlu1 %1488 }
 0x70c   : > { %v1540_v3 = vpop.permute.xlu0 %1539 }
 0x70e   : > { %v1542_v63 = vpop.permute.xlu1 %1541 }
 0x70f   : > { %v3811_v54 = vpop.eup %3810  ;;  %v1547_v1 = vsel %vm864_vm1, %v1542_v63, 0  ;;  %v3696_v63 = vld [vmem:[%s4406_s30] sm:$0xff]  }
 0x710   : > { %v1247_v56 = vmul.f32 %v3811_v54, %v3807_v28 }
 0x711   : > { %v3813_v55 = vpop.eup %3812 }
 0x712   : > { %v1249_v59 = vmul.f32 %v3813_v55, %v3809_v30 }
 0x714   : > { %v1251_v60 = vpack.c.bf16 %v1249_v59, %v1247_v56 }
 0x716   : > { %3483 = vmatmul.mubr.msk.bf16.vlgmr.msra.gmra.mrb[20].mxu0 %vm959_vm2, %v1251_v60 }
 0x717   : > { %3503 = vmatpush3.bf16.xpose.msra.mxu0 %v1496_v62  ;;  %3504 = vmatprep.mubr.msk.bf16.mxu0 %vm4135_vm0, %v4134_v13  ;;  %v3695_v62 = vld [vmem:[%s4406_s30 + $0x18] sm:$0xff]  }
 0x718   : > { %3508 = vmatprep.subr.bf16.mxu0 %v4134_v13 }
 0x71e   : > { %3505 = vmatmul.mubr.msk.bf16.vlgmr.msra.gmra.mrb[24].mxu0 %vm864_vm1, %v1489_v61  ;;  %v3694_v61 = vld [vmem:[%s4406_s30 + $0x10] sm:$0xff]  }
 0x71f   : > { %3509 = vmatpush3.bf16.xpose.msra.mxu0 %v1547_v1  ;;  %3510 = vmatprep.mubr.msk.bf16.mxu0 %vm4135_vm0, %v4134_v13 }
 0x720   : > { %3520 = vmatprep.subr.bf16.mxu0 %v4134_v13 }
 0x726   : > { %3511 = vmatmul.mubr.msk.bf16.vlgmr.msra.gmra.mrb[28].mxu0 %vm864_vm1, %v1540_v3 }
 0x727   : > { %3522 = vmatprep.mubr.msk.bf16.mxu0 %vm4135_vm0, %v4134_v13 }
 0x73d   : > { %v1211_v7 = vpop.xlane.xlu0 %1210 }
 0x73e   : > { %v1219_v8 = vsub.f32 %v1150_v43, %v1211_v7 }
 0x73f   : > { %v1208_v9 = vpop.xlane.xlu1 %1207 }
 0x740   : > { %v1218_v10 = vsub.f32 %v1147_v45, %v1208_v9  ;;  %v1224_v11 = vmul.f32 1.442695, %v1219_v8 }
 0x742   : > { %v1222_v12 = vmul.f32 1.442695, %v1218_v10 }
 0x743   : > { %v1254_v14 = vpop.permute.xlu1 %1253 }
 0x744   : > { %3814 = vpow2.f32 %v1222_v12  ;;  %3475 = vmatpush3.bf16.msra.mxu1 %v1254_v14 }
 0x745   : > { %3816 = vpow2.f32 %v1224_v11  ;;  %3486 = vmatprep.subr.bf16.mxu1 %v3694_v61 }
 0x74e   : > { %v3815_v17 = vpop.eup %3814 }
 0x74f   : > { %v1230_v19 = vsel %vm959_vm2, %v3815_v17, 0.0  ;;  %v3817_v21 = vpop.eup %3816 }
 0x750   : > { %1231 = vadd.xlane.f32.xlu0 %v1230_v19  ;;  %v1233_v22 = vsel %vm959_vm2, %v3817_v21, 0.0 }
 0x754   : > { %1234 = vadd.xlane.f32.xlu0 %v1233_v22 }
 0x7dd   : > { %v1232_v23 = vpop.xlane.xlu0 %1231 }
 0x7de   : > { %3818 = vrcp.f32 %v1232_v23 }
 0x7e1   : > { %v1235_v24 = vpop.xlane.xlu0 %1234 }
 0x7e2   : > { %3820 = vrcp.f32 %v1235_v24 }
 0x7e8   : > { %v3819_v26 = vpop.eup %3818 }
 0x7e9   : > { %v4651_v25 = vpop.f32.mrb[20].mxu0  ;;  %v1243_v33 = vmul.f32 %v3819_v26, %v3815_v17 }
 0x7ea   : > { %v3484_v27 = vpop.f32.mrb[21].mxu0 }
 0x7eb   : > { %v4653_v28 = vpop.f32.mrb[22].mxu0 }
 0x7ec   : > { %v3821_v29 = vpop.eup %3820  ;;  %v1349_v30 = vpack.c.bf16 %v4653_v28, %v4651_v25  ;;  %v3485_v31 = vpop.f32.mrb[23].mxu0 }
 0x7ed   : > { %v1245_v38 = vmul.f32 %v3821_v29, %v3817_v21 }
 0x7ef   : > { %v1250_v40 = vpack.c.bf16 %v1245_v38, %v1243_v33 }
 0x7f1   : > { %3477 = vmatmul.mubr.msk.bf16.vlgmr.msra.gmra.mrb[16].mxu1 %vm959_vm2, %v1250_v40  ;;  %v1532_v41 = vpop.f32.mrb[24].mxu0 }
 0x7f2   : > { %v1533_v42 = vadd.f32 %v1532_v41, %v4558_v0  ;;  %v3506_v43 = vpop.f32.mrb[25].mxu0  ;;  %3487 = vmatpush3.bf16.msra.mxu1 %v3694_v61 }
 0x7f3   : > { %v1535_v44 = vpop.f32.mrb[26].mxu0  ;;  %3488 = vmatprep.subr.bf16.mxu1 %v3695_v62 }
 0x7f4   : > { %v1536_v45 = vadd.f32 %v1535_v44, %v4564_v4  ;;  %v3507_v47 = vpop.f32.mrb[27].mxu0  ;;  %v1590_v48 = vsel %vm959_vm2, %v1533_v42, -inf  ;;  %v3697_v44 = vld [vmem:[%s4406_s30 + $0x8] sm:$0xff]  }
 0x7f5   : > { %1591 = vmax.xlane.f32.xlu0 %v1590_v48 }
 0x7f6   : > { %v1593_v50 = vsel %vm959_vm2, %v1536_v45, -inf  ;;  %3489 = vmatpush3.bf16.msra.mxu1 %v3695_v62 }
 0x7f7   : > { %3494 = vmatprep.subr.bf16.mxu1 %v3696_v63 }
 0x7f9   : > { %1594 = vmax.xlane.f32.xlu0 %v1593_v50  ;;  %v1583_v51 = vpop.f32.mrb[28].mxu0 }
 0x7fa   : > { %v1584_v52 = vadd.f32 %v1583_v51, %v4558_v0  ;;  %v3512_v53 = vpop.f32.mrb[29].mxu0 }
 0x7fb   : > { %v1586_v54 = vpop.f32.mrb[30].mxu0 }
 0x7fc   : > { %v1587_v55 = vadd.f32 %v1586_v54, %v4564_v4  ;;  %v3513_v56 = vpop.f32.mrb[31].mxu0  ;;  %v1596_v59 = vsel %vm959_vm2, %v1584_v52, -inf }
 0x7fd   : > { %1597 = vmax.xlane.f32.xlu0 %v1596_v59 }
 0x7fe   : > { %v1599_v60 = vsel %vm959_vm2, %v1587_v55, -inf }
 0x801   : > { %1600 = vmax.xlane.f32.xlu0 %v1599_v60 }
 0x882   : > { %v1592_v1 = vpop.xlane.xlu0 %1591 }
 0x883   : > { %v1602_v3 = vsub.f32 %v1533_v42, %v1592_v1 }
 0x885   : > { %v1606_v7 = vmul.f32 1.442695, %v1602_v3 }
 0x886   : > { %v1595_v8 = vpop.xlane.xlu0 %1594 }
 0x887   : > { %3822 = vpow2.f32 %v1606_v7  ;;  %v1603_v9 = vsub.f32 %v1536_v45, %v1595_v8 }
 0x889   : > { %v1608_v10 = vmul.f32 1.442695, %v1603_v9 }
 0x88a   : > { %v1598_v11 = vpop.xlane.xlu0 %1597 }
 0x88b   : > { %3824 = vpow2.f32 %v1608_v10  ;;  %v1604_v12 = vsub.f32 %v1584_v52, %v1598_v11 }
 0x88d   : > { %v1610_v14 = vmul.f32 1.442695, %v1604_v12 }
 0x88e   : > { %v1601_v17 = vpop.xlane.xlu0 %1600 }
 0x88f   : > { %3826 = vpow2.f32 %v1610_v14  ;;  %v1605_v19 = vsub.f32 %v1587_v55, %v1601_v17  ;;  %v3699_v55 = vld [vmem:[%s4406_s30 + $0x28] sm:$0xff]  }
 0x891   : > { %v3823_v21 = vpop.eup %3822  ;;  %v1612_v22 = vmul.f32 1.442695, %v1605_v19 }
 0x892   : > { %v1614_v23 = vsel %vm959_vm2, %v3823_v21, 0.0 }
 0x893   : > { %3828 = vpow2.f32 %v1612_v22  ;;  %1615 = vadd.xlane.f32.xlu1 %v1614_v23 }
 0x895   : > { %v3825_v24 = vpop.eup %3824 }
 0x896   : > { %v1617_v26 = vsel %vm959_vm2, %v3825_v24, 0.0 }
 0x897   : > { %1618 = vadd.xlane.f32.xlu0 %v1617_v26 }
 0x899   : > { %v3827_v27 = vpop.eup %3826 }
 0x89a   : > { %v1620_v29 = vsel %vm959_vm2, %v3827_v27, 0.0 }
 0x89b   : > { %1621 = vadd.xlane.f32.xlu0 %v1620_v29 }
 0x89d   : > { %v3829_v31 = vpop.eup %3828 }
 0x89e   : > { %v1623_v33 = vsel %vm959_vm2, %v3829_v31, 0.0 }
 0x89f   : > { %1624 = vadd.xlane.f32.xlu0 %v1623_v33 }
 0x8a4   : > { %1683 = vrot.lane.b32.xlu1 %v4531_v46, %s4137_s19 }
 0x8b5   : > { %1636 = vrot.lane.b32.xlu0 %v4533_v49, %s4137_s19 }
 0x8b9   : > { %1809 = vrot.lane.b32.xlu0 %v4525_v35, %s4138_s18 }
 0x8bd   : > { %1860 = vrot.lane.b32.xlu0 %v4536_v57, %s4138_s18 }
 0x8c1   : > { %1807 = vrot.lane.b32.xlu0 %v4527_v37, %s4138_s18 }
 0x8c4   : > { %v1293_v38 = vpop.f32.mrb[16].mxu1 }
 0x8c5   : > { %v3478_v40 = vpop.f32.mrb[17].mxu1  ;;  %1858 = vrot.lane.b32.xlu0 %v4538_v58, %s4138_s18 }
 0x8c6   : > { %v1296_v41 = vpop.f32.mrb[18].mxu1 }
 0x8c7   : > { %v1348_v42 = vpack.c.bf16 %v1296_v41, %v1293_v38  ;;  %v3479_v43 = vpop.f32.mrb[19].mxu1 }
 0x8c9   : > { %3490 = vmatprep.mubr.msk.bf16.mxu1 %vm864_vm1, %v1348_v42 }
 0x8ca   : > { %3491 = vmatmul.mubr.msk.bf16.vlgmr.msra.gmra.mrb[20].mxu1 %vm864_vm1, %v1349_v30 }
 0x8cb   : > { %3498 = vmatprep.mubr.msk.bf16.mxu1 %vm864_vm1, %v1094_v36  ;;  %3495 = vmatpush3.bf16.msra.mxu1 %v3696_v63  ;;  %v3698_v36 = vld [vmem:[%s4406_s30 + $0x20] sm:$0xff]  }
 0x8cc   : > { %3496 = vmatprep.subr.bf16.mxu1 %v3697_v44 }
 0x8cf   : > { %3497 = vmatpush3.bf16.msra.mxu1 %v3697_v44 }
 0x8d0   : > { %3514 = vmatprep.subr.bf16.mxu1 %v4134_v13 }
 0x8d6   : > { %3499 = vmatmul.mubr.msk.bf16.vlgmr.msra.gmra.mrb[20].mxu1 %vm864_vm1, %v1095_v6 }
 0x8d7   : > { %3516 = vmatprep.mubr.msk.bf16.mxu1 %vm4135_vm0, %v4134_v13 }
 0x920   : > { %v1616_v35 = vpop.xlane.xlu1 %1615 }
 0x921   : > { %3830 = vrcp.f32 %v1616_v35 }
 0x924   : > { %v1684_v37 = vpop.permute.xlu1 %1683  ;;  %v1619_v57 = vpop.xlane.xlu0 %1618 }
 0x925   : > { %3832 = vrcp.f32 %v1619_v57  ;;  %3521 = vmatpush3.bf16.msra.mxu0 %v1684_v37 }
 0x926   : > { %3534 = vmatprep.subr.bf16.mxu0 %v4134_v13 }
 0x928   : > { %v1622_v58 = vpop.xlane.xlu0 %1621 }
 0x929   : > { %3834 = vrcp.f32 %v1622_v58 }
 0x92b   : > { %v3831_v34 = vpop.eup %3830 }
 0x92c   : > { %v1625_v32 = vpop.xlane.xlu0 %1624  ;;  %v1627_v5 = vmul.f32 %v3831_v34, %v3823_v21 }
 0x92d   : > { %3836 = vrcp.f32 %v1625_v32 }
 0x92f   : > { %v3833_v2 = vpop.eup %3832 }
 0x930   : > { %v1629_v6 = vmul.f32 %v3833_v2, %v3825_v24  ;;  %v1637_v25 = vpop.permute.xlu0 %1636 }
 0x931   : > { %3515 = vmatpush3.bf16.msra.mxu1 %v1637_v25 }
 0x932   : > { %v1634_v28 = vpack.c.bf16 %v1629_v6, %v1627_v5  ;;  %3526 = vmatprep.subr.bf16.mxu1 %v3698_v36 }
 0x933   : > { %v3835_v30 = vpop.eup %3834 }
 0x934   : > { %3517 = vmatmul.mubr.msk.bf16.vlgmr.msra.gmra.mrb[24].mxu1 %vm959_vm2, %v1634_v28  ;;  %v1810_v47 = vpop.permute.xlu0 %1809  ;;  %v1631_v48 = vmul.f32 %v3835_v30, %v3827_v27 }
 0x935   : > { %3527 = vmatpush3.bf16.msra.mxu1 %v3698_v36  ;;  %v1815_v52 = vsel %vm864_vm1, %v1810_v47, 0 }
 0x936   : > { %3528 = vmatprep.subr.bf16.mxu1 %v3699_v55 }
 0x937   : > { %v3837_v45 = vpop.eup %3836 }
 0x938   : > { %v1633_v50 = vmul.f32 %v3837_v45, %v3829_v31  ;;  %v1861_v53 = vpop.permute.xlu0 %1860 }
 0x939   : > { %3529 = vmatpush3.bf16.msra.mxu1 %v3699_v55  ;;  %v1866_v9 = vsel %vm864_vm1, %v1861_v53, 0 }
 0x93a   : > { %v1635_v51 = vpack.c.bf16 %v1633_v50, %v1631_v48  ;;  %3540 = vmatprep.subr.bf16.mxu1 %v4134_v13 }
 0x93c   : > { %3523 = vmatmul.mubr.msk.bf16.vlgmr.msra.gmra.mrb[32].mxu0 %vm959_vm2, %v1635_v51  ;;  %v1808_v54 = vpop.permute.xlu0 %1807 }
 0x93d   : > { %3535 = vmatpush3.bf16.xpose.msra.mxu0 %v1815_v52  ;;  %3536 = vmatprep.mubr.msk.bf16.mxu0 %vm4135_vm0, %v4134_v13 }
 0x93e   : > { %3546 = vmatprep.subr.bf16.mxu0 %v4134_v13 }
 0x940   : > { %v1859_v22 = vpop.permute.xlu0 %1858 }
 0x944   : > { %3537 = vmatmul.mubr.msk.bf16.vlgmr.msra.gmra.mrb[36].mxu0 %vm864_vm1, %v1808_v54 }
 0x945   : > { %3548 = vmatprep.mubr.msk.bf16.mxu0 %vm4135_vm0, %v4134_v13 }
 0xa07   : > { %v1676_v56 = vpop.f32.mrb[24].mxu1 }
 0xa08   : > { %v3518_v59 = vpop.f32.mrb[25].mxu1 }
 0xa09   : > { %v1679_v60 = vpop.f32.mrb[26].mxu1 }
 0xa0a   : > { %v1730_v61 = vpack.c.bf16 %v1679_v60, %v1676_v56  ;;  %v3519_v62 = vpop.f32.mrb[27].mxu1 }
 0xa0c   : > { %3530 = vmatprep.mubr.msk.bf16.mxu1 %vm864_vm1, %v1730_v61 }
 0xa0f   : > { %v1723_v63 = vpop.f32.mrb[32].mxu0 }
 0xa10   : > { %v3524_v1 = vpop.f32.mrb[33].mxu0 }
 0xa11   : > { %v1726_v3 = vpop.f32.mrb[34].mxu0  ;;  %v3701_v1 = vld [vmem:[%s4406_s30 + $0x38] sm:$0xff]  }
 0xa12   : > { %v1731_v7 = vpack.c.bf16 %v1726_v3, %v1723_v63  ;;  %v3525_v8 = vpop.f32.mrb[35].mxu0  ;;  %v3700_v63 = vld [vmem:[%s4406_s30 + $0x30] sm:$0xff]  }
 0xa14   : > { %3531 = vmatmul.mubr.msk.bf16.vlgmr.msra.gmra.mrb[20].mxu1 %vm864_vm1, %v1731_v7 }
 0xa15   : > { %3541 = vmatpush3.bf16.xpose.msra.mxu1 %v1866_v9  ;;  %3542 = vmatprep.mubr.msk.bf16.mxu1 %vm4135_vm0, %v4134_v13 }
 0xa16   : > { %3552 = vmatprep.subr.bf16.mxu1 %v4134_v13 }
 0xa17   : > { %v1851_v10 = vpop.f32.mrb[36].mxu0 }
 0xa18   : > { %v1852_v11 = vadd.f32 %v1851_v10, %v4558_v0  ;;  %v3538_v12 = vpop.f32.mrb[37].mxu0 }
 0xa19   : > { %v1854_v14 = vpop.f32.mrb[38].mxu0 }
 0xa1a   : > { %v1855_v17 = vadd.f32 %v1854_v14, %v4564_v4  ;;  %v3539_v19 = vpop.f32.mrb[39].mxu0  ;;  %v1909_v21 = vsel %vm959_vm2, %v1852_v11, -inf }
 0xa1b   : > { %1910 = vmax.xlane.f32.xlu0 %v1909_v21 }
 0xa1c   : > { %3543 = vmatmul.mubr.msk.bf16.vlgmr.msra.gmra.mrb[28].mxu1 %vm864_vm1, %v1859_v22  ;;  %v1912_v23 = vsel %vm959_vm2, %v1855_v17, -inf  ;;  %v3227_v22 = vld [vmem:[%s4435_s26 + $0x4] ss:$0 sm:$0xff] }
 0xa1d   : > { %1913 = vmax.xlane.f32.xlu1 %v1912_v23  ;;  %3554 = vmatprep.mubr.msk.bf16.mxu1 %vm4135_vm0, %v4134_v13 }
 0xaa8   : > { %v1911_v24 = vpop.xlane.xlu0 %1910 }
 0xaa9   : > { %v1921_v26 = vsub.f32 %v1852_v11, %v1911_v24  ;;  %v3894_v24 = vld [vmem:[#allocation2] sm:$0xff] }
 0xaaa   : > { %v1914_v33 = vpop.xlane.xlu1 %1913 }
 0xaab   : > { %v1925_v27 = vmul.f32 1.442695, %v1921_v26  ;;  %v1922_v38 = vsub.f32 %v1855_v17, %v1914_v33 }
 0xaad   : > { %3838 = vpow2.f32 %v1925_v27  ;;  %v1927_v40 = vmul.f32 1.442695, %v1922_v38 }
 0xaaf   : > { %3840 = vpow2.f32 %v1927_v40  ;;  %v3896_v40 = vld [vmem:[#allocation2 + $0x8] sm:$0xff] }
 0xab7   : > { %v3839_v29 = vpop.eup %3838 }
 0xab8   : > { %v1933_v31 = vsel %vm959_vm2, %v3839_v29, 0.0 }
 0xab9   : > { %1934 = vadd.xlane.f32.xlu1 %v1933_v31  ;;  %v3841_v58 = vpop.eup %3840  ;;  %v3895_v31 = vld [vmem:[#allocation2 + $0x10] sm:$0xff] }
 0xaba   : > { %v1936_v32 = vsel %vm959_vm2, %v3841_v58, 0.0 }
 0xaef   : > { %v1902_v41 = vpop.f32.mrb[28].mxu1 }
 0xaf0   : > { %v1903_v42 = vadd.f32 %v1902_v41, %v4558_v0  ;;  %v3544_v43 = vpop.f32.mrb[29].mxu1 }
 0xaf1   : > { %v1905_v44 = vpop.f32.mrb[30].mxu1 }
 0xaf2   : > { %v1906_v35 = vadd.f32 %v1905_v44, %v4564_v4  ;;  %v3545_v13 = vpop.f32.mrb[31].mxu1  ;;  %v1915_v37 = vsel %vm959_vm2, %v1903_v42, -inf }
 0xaf3   : > { %1916 = vmax.xlane.f32.xlu0 %v1915_v37  ;;  %v3702_v37 = vld [vmem:[%s4412_s24] ss:$16 sps:$4 sm:$0xff]  }
 0xaf4   : > { %v1918_v57 = vsel %vm959_vm2, %v1906_v35, -inf }
 0xaf7   : > { %1919 = vmax.xlane.f32.xlu0 %v1918_v57  ;;  %v3704_v57 = vld [vmem:[%s4412_s24 + $0x4] ss:$16 sps:$4 sm:$0xff]  }
 0xafb   : > { %1937 = vadd.xlane.f32.xlu0 %v1936_v32  ;;  %v3707_v32 = vld [vmem:[%s4412_s24 + $0xc] ss:$16 sps:$4 sm:$0xff]  }
 0xb46   : > { %v1935_v47 = vpop.xlane.xlu1 %1934 }
 0xb80   : > { %v1917_v34 = vpop.xlane.xlu0 %1916 }
 0xb81   : > { %v1923_v36 = vsub.f32 %v1903_v42, %v1917_v34  ;;  %v3897_v42 = vld [vmem:[#allocation2 + $0x18] sm:$0xff]  ;;  %v3710_v34 = vld [vmem:[%s4412_s24 + $0x24] ss:$16 sps:$4 sm:$0xff]  }
 0xb83   : > { %v1929_v2 = vmul.f32 1.442695, %v1923_v36  ;;  %v3713_v36 = vld [vmem:[%s4412_s24 + $0x2c] ss:$16 sps:$4 sm:$0xff]  }
 0xb84   : > { %v1920_v5 = vpop.xlane.xlu0 %1919 }
 0xb85   : > { %3842 = vpow2.f32 %v1929_v2  ;;  %v1924_v0 = vsub.f32 %v1906_v35, %v1920_v5  ;;  %v3708_v2 = vld [vmem:[%s4412_s24 + $0x20] ss:$16 sps:$4 sm:$0xff]   ;;  %v3711_v5 = vld [vmem:[%s4412_s24 + $0x28] ss:$16 sps:$4 sm:$0xff]  }
 0xb87   : > { %v1931_v6 = vmul.f32 1.442695, %v1924_v0 }
 0xb88   : > { %v1938_v45 = vpop.xlane.xlu0 %1937 }
 0xb89   : > { %3844 = vpow2.f32 %v1931_v6 }
 0xb8a   : > { %3846 = vrcp.f32 %v1938_v45 }
 0xb8b   : > { %3848 = vrcp.f32 %v1935_v47 }
 0xb8f   : > { %v3843_v4 = vpop.eup %3842 }
 0xb90   : > { %v1939_v25 = vsel %vm959_vm2, %v3843_v4, 0.0 }
 0xb91   : > { %1940 = vadd.xlane.f32.xlu1 %v1939_v25 }
 0xb93   : > { %v3845_v28 = vpop.eup %3844 }
 0xb94   : > { %v1942_v30 = vsel %vm959_vm2, %v3845_v28, 0.0  ;;  %v3847_v48 = vpop.eup %3846 }
 0xb95   : > { %1943 = vadd.xlane.f32.xlu0 %v1942_v30  ;;  %v3849_v51 = vpop.eup %3848  ;;  %v1948_v52 = vmul.f32 %v3847_v48, %v3841_v58  ;;  %v3705_v58 = vld [vmem:[%s4412_s24 + $0x8] ss:$16 sps:$4 sm:$0xff]  }
 0xb96   : > { %v1946_v53 = vmul.f32 %v3849_v51, %v3839_v29 }
 0xba2   : > { %1955 = vrot.lane.b32.xlu1 %v4533_v49, %s4138_s18  ;;  %v1953_v49 = vpack.c.bf16 %v1948_v52, %v1946_v53 }
 0xbab   : > { %2002 = vrot.lane.b32.xlu0 %v4531_v46, %s4138_s18 }
 0xc1e   : > { %v1941_v50 = vpop.xlane.xlu1 %1940 }
 0xc1f   : > { %3850 = vrcp.f32 %v1941_v50 }
 0xc22   : > { %v1944_v54 = vpop.xlane.xlu0 %1943  ;;  %v1956_v55 = vpop.permute.xlu1 %1955 }
 0xc23   : > { %3852 = vrcp.f32 %v1944_v54  ;;  %3547 = vmatpush3.bf16.msra.mxu0 %v1956_v55 }
 0xc24   : > { %2414 = vmatprep.subr.bf16.mxu0 %v3704_v57 }
 0xc26   : > { %v2003_v56 = vpop.permute.xlu0 %2002  ;;  %3549 = vmatmul.mubr.msk.bf16.vlgmr.msra.gmra.mrb[40].mxu0 %vm959_vm2, %v1953_v49 }
 0xc27   : > { %3553 = vmatpush3.bf16.msra.mxu1 %v2003_v56  ;;  %2446 = vmatprep.mubr.bf16.mxu0 %v4133_v39  ;;  %v3716_v56 = vld [vmem:[%s4412_s24 + $0x44] ss:$16 sps:$4 sm:$0xff]  }
 0xc28   : > { %3558 = vmatprep.subr.bf16.mxu1 %v3700_v63  ;;  %2415 = vmatpush1.bf16.msra.mxu0 %v3702_v37 }
 0xc29   : > { %v3851_v46 = vpop.eup %3850  ;;  %2416 = vmatprep.subr.bf16.mxu0 %v3710_v34 }
 0xc2a   : > { %v1950_v60 = vmul.f32 %v3851_v46, %v3843_v4  ;;  %v3719_v46 = vld [vmem:[%s4412_s24 + $0x4c] ss:$16 sps:$4 sm:$0xff]  }
 0xc2c   : > { %2417 = vmatpush1.bf16.msra.mxu0 %v3708_v2 }
 0xc2d   : > { %v3853_v59 = vpop.eup %3852  ;;  %2418 = vmatprep.subr.bf16.mxu0 %v3716_v56 }
 0xc2e   : > { %v1952_v61 = vmul.f32 %v3853_v59, %v3845_v28  ;;  %v3714_v59 = vld [vmem:[%s4412_s24 + $0x40] ss:$16 sps:$4 sm:$0xff]  }
 0xc30   : > { %v1954_v62 = vpack.c.bf16 %v1952_v61, %v1950_v60  ;;  %v3717_v60 = vld [vmem:[%s4412_s24 + $0x48] ss:$16 sps:$4 sm:$0xff]   ;;  %2419 = vmatpush1.bf16.msra.mxu0 %v3714_v59  ;;  %v3722_v61 = vld [vmem:[%s4412_s24 + $0x64] ss:$16 sps:$4 sm:$0xff]  }
 0xc31   : > { %2420 = vmatprep.subr.bf16.mxu0 %v3722_v61  ;;  %v3752_v59 = vld [vmem:[%s4414_s16] sm:$0xff]   ;;  %v3754_v61 = vld [vmem:[%s4414_s16 + $0x48] sm:$0xff]  }
 0xc32   : > { %3555 = vmatmul.mubr.msk.bf16.vlgmr.msra.gmra.mrb[32].mxu1 %vm959_vm2, %v1954_v62  ;;  %v3725_v62 = vld [vmem:[%s4412_s24 + $0x6c] ss:$16 sps:$4 sm:$0xff]  }
 0xc33   : > { %3559 = vmatpush3.bf16.msra.mxu1 %v3700_v63  ;;  %v3720_v63 = vld [vmem:[%s4412_s24 + $0x60] ss:$16 sps:$4 sm:$0xff]  }
 0xc34   : > { %3560 = vmatprep.subr.bf16.mxu1 %v3701_v1  ;;  %2421 = vmatpush1.bf16.msra.mxu0 %v3720_v63  ;;  %v3757_v63 = vld [vmem:[%s4414_s16 + $0x88] sm:$0xff]  }
 0xc37   : > { %3561 = vmatpush3.bf16.msra.mxu1 %v3701_v1  ;;  %v3723_v1 = vld [vmem:[%s4412_s24 + $0x68] ss:$16 sps:$4 sm:$0xff]  }
 0xc38   : > { %2467 = vmatprep.subr.bf16.mxu1 %v3707_v32 }
 0xcf9   : > { %v1995_v3 = vpop.f32.mrb[40].mxu0 }
 0xcfa   : > { %v3550_v7 = vpop.f32.mrb[41].mxu0 }
 0xcfb   : > { %v1998_v8 = vpop.f32.mrb[42].mxu0  ;;  %v3731_v7 = vld [vmem:[%s4412_s24 + $0x8c] ss:$16 sps:$4 sm:$0xff]  }
 0xcfc   : > { %v2049_v9 = vpack.c.bf16 %v1998_v8, %v1995_v3  ;;  %v3551_v10 = vpop.f32.mrb[43].mxu0  ;;  %v3728_v3 = vld [vmem:[%s4412_s24 + $0x84] ss:$16 sps:$4 sm:$0xff]   ;;  %v3726_v8 = vld [vmem:[%s4412_s24 + $0x80] ss:$16 sps:$4 sm:$0xff]  }
 0xcfd   : > { %2422 = vmatprep.subr.bf16.mxu0 %v3728_v3  ;;  %v3734_v10 = vld [vmem:[%s4412_s24 + $0xa4] ss:$16 sps:$4 sm:$0xff]  }
 0xcfe   : > { %3562 = vmatprep.mubr.msk.bf16.mxu1 %vm864_vm1, %v2049_v9  ;;  %v3729_v9 = vld [vmem:[%s4412_s24 + $0x88] ss:$16 sps:$4 sm:$0xff]   ;;  %2423 = vmatpush1.bf16.msra.mxu0 %v3726_v8  ;;  %v3760_v8 = vld [vmem:[%s4414_s16 + $0x10] sm:$0xff]  }
 0xcff   : > { %2424 = vmatprep.subr.bf16.mxu0 %v3734_v10  ;;  %v3762_v10 = vld [vmem:[%s4414_s16 + $0x58] sm:$0xff]  }
 0xd05   : > { %v2042_v11 = vpop.f32.mrb[32].mxu1 }
 0xd06   : > { %v3556_v12 = vpop.f32.mrb[33].mxu1 }
 0xd07   : > { %v2045_v14 = vpop.f32.mrb[34].mxu1  ;;  %v3732_v12 = vld [vmem:[%s4412_s24 + $0xa0] ss:$16 sps:$4 sm:$0xff]  }
 0xd08   : > { %v2050_v17 = vpack.c.bf16 %v2045_v14, %v2042_v11  ;;  %v3557_v19 = vpop.f32.mrb[35].mxu1  ;;  %v3737_v11 = vld [vmem:[%s4412_s24 + $0xac] ss:$16 sps:$4 sm:$0xff]   ;;  %v3735_v14 = vld [vmem:[%s4412_s24 + $0xa8] ss:$16 sps:$4 sm:$0xff]   ;;  %2425 = vmatpush1.bf16.msra.mxu0 %v3732_v12 }
 0xd09   : > { %v3743_v19 = vld [vmem:[%s4412_s24 + $0xcc] ss:$16 sps:$4 sm:$0xff]  }
 0xd0a   : > { %3563 = vmatmul.mubr.msk.bf16.vlgmr.msra.gmra.mrb[20].mxu1 %vm864_vm1, %v2050_v17  ;;  %v3740_v17 = vld [vmem:[%s4412_s24 + $0xc4] ss:$16 sps:$4 sm:$0xff]   ;;  %v3764_v12 = vld [vmem:[%s4414_s16 + $0x18] sm:$0xff]  }
 0xd0b   : > { %2499 = vmatprep.mubr.bf16.mxu1 %v4133_v39  ;;  %2468 = vmatpush1.bf16.msra.mxu1 %v3705_v58 }
 0xd0c   : > { %2469 = vmatprep.subr.bf16.mxu1 %v3713_v36  ;;  %2426 = vmatprep.subr.bf16.mxu0 %v3740_v17  ;;  %v3766_v17 = vld [vmem:[%s4414_s16 + $0x60] sm:$0xff]  }
 0xd0f   : > { %2470 = vmatpush1.bf16.msra.mxu1 %v3711_v5 }
 0xd10   : > { %2471 = vmatprep.subr.bf16.mxu1 %v3719_v46 }
 0xd13   : > { %2472 = vmatpush1.bf16.msra.mxu1 %v3717_v60  ;;  %v3753_v60 = vld [vmem:[%s4414_s16 + $0x80] sm:$0xff]  }
 0xd14   : > { %2473 = vmatprep.subr.bf16.mxu1 %v3725_v62  ;;  %v3755_v62 = vld [vmem:[%s4414_s16 + $0xc8] sm:$0xff]  }
 0xd17   : > { %2474 = vmatpush1.bf16.msra.mxu1 %v3723_v1 }
 0xd18   : > { %2475 = vmatprep.subr.bf16.mxu1 %v3731_v7  ;;  %v3759_v7 = vld [vmem:[%s4414_s16 + $0xd0] sm:$0xff]  }
 0xd1b   : > { %2476 = vmatpush1.bf16.msra.mxu1 %v3729_v9  ;;  %v3761_v9 = vld [vmem:[%s4414_s16 + $0x90] sm:$0xff]  }
 0xd1c   : > { %2477 = vmatprep.subr.bf16.mxu1 %v3737_v11  ;;  %v3763_v11 = vld [vmem:[%s4414_s16 + $0xd8] sm:$0xff]  }
 0xd1f   : > { %2478 = vmatpush1.bf16.msra.mxu1 %v3735_v14  ;;  %v3765_v14 = vld [vmem:[%s4414_s16 + $0x98] sm:$0xff]  }
 0xd20   : > { %2479 = vmatprep.subr.bf16.mxu1 %v3743_v19  ;;  %v3767_v19 = vld [vmem:[%s4414_s16 + $0xe0] sm:$0xff]  }
 0xddd   : > { %v3564_v21 = vpop.f32.mrb[20].mxu1 }
 0xdde   : > { %v2107_v23 = vpop.f32.mrb[21].mxu1  ;;  %v2128_v33 = vadd.f32 %v3895_v31, %v3564_v21  ;;  %v3738_v21 = vld [vmem:[%s4412_s24 + $0xc0] ss:$16 sps:$4 sm:$0xff]  }
 0xddf   : > { %v2126_v26 = vadd.f32 %v3894_v24, %v2107_v23  ;;  %v3565_v27 = vpop.f32.mrb[22].mxu1  ;;  %v3746_v23 = vld [vmem:[%s4412_s24 + $0xe4] ss:$16 sps:$4 sm:$0xff]   ;;  %v3749_v24 = vld [vmem:[%s4412_s24 + $0xec] ss:$16 sps:$4 sm:$0xff]   ;;  %2427 = vmatpush1.bf16.msra.mxu0 %v3738_v21 }
 0xde0   : > { %v2110_v29 = vpop.f32.mrb[23].mxu1  ;;  %v2129_v43 = vadd.f32 %v3897_v42, %v3565_v27  ;;  %v4754_v35 = vadd.f32 %v3227_v22, %v2128_v33  ;;  %v3747_v27 = vld [vmem:[%s4412_s24 + $0xe8] ss:$16 sps:$4 sm:$0xff]   ;;  %2428 = vmatprep.subr.bf16.mxu0 %v3746_v23  ;;  %v3751_v31 = vld [vmem:[%s4414_s16 + $0xc0] sm:$0xff]  }
 0xde1   : > { %v4749_v38 = vadd.f32 %v3227_v22, %v2126_v26  ;;  %v2127_v41 = vadd.f32 %v3896_v40, %v2110_v29  ;;  %v3744_v26 = vld [vmem:[%s4412_s24 + $0xe0] ss:$16 sps:$4 sm:$0xff]   ;;  %v3770_v23 = vld [vmem:[%s4414_s16 + $0x68] sm:$0xff]  }
 0xde2   : > { %v4757_v13 = vadd.f32 %v3227_v22, %v2129_v43  ;;  %v3750_v29 = vld [vmem:[%s4414_s16 + $0x40] sm:$0xff]  }
 0xde3   : > { %v4751_v44 = vadd.f32 %v3227_v22, %v2127_v41  ;;  %2138 = vadd.xlane.f32.xlu1 %v4749_v38  ;;  %v3741_v22 = vld [vmem:[%s4412_s24 + $0xc8] ss:$16 sps:$4 sm:$0xff]   ;;  %2429 = vmatpush1.bf16.msra.mxu0 %v3744_v26  ;;  %v3768_v21 = vld [vmem:[%s4414_s16 + $0x20] sm:$0xff]  }
 0xde4   : > { %2480 = vmatpush1.bf16.msra.mxu1 %v3741_v22  ;;  %3362 = vmatprep.subr.bf16.mxu0 %v3750_v29  ;;  %v3769_v22 = vld [vmem:[%s4414_s16 + $0xa0] sm:$0xff]   ;;  %v3772_v26 = vld [vmem:[%s4414_s16 + $0x28] sm:$0xff]   ;;  %v3774_v29 = vld [vmem:[%s4414_s16 + $0x70] sm:$0xff]  }
 0xde5   : > { %2140 = vadd.xlane.f32.xlu0 %v4751_v44  ;;  %2481 = vmatprep.subr.bf16.mxu1 %v3749_v24  ;;  %v3771_v24 = vld [vmem:[%s4414_s16 + $0xe8] sm:$0xff]  }
 0xde7   : > { %2142 = vadd.xlane.f32.xlu1 %v4754_v35 }
 0xde8   : > { %2482 = vmatpush1.bf16.msra.mxu1 %v3747_v27  ;;  %v3773_v27 = vld [vmem:[%s4414_s16 + $0xa8] sm:$0xff]  }
 0xde9   : > { %2144 = vadd.xlane.f32.xlu0 %v4757_v13  ;;  %3390 = vmatprep.subr.bf16.mxu1 %v3751_v31  ;;  %v3775_v31 = vld [vmem:[%s4414_s16 + $0xf0] sm:$0xff]  }
 0xe70   : > { %v2139_v0 = vpop.xlane.xlu1 %2138 }
 0xe71   : > { %v2146_v6 = vmul.f32 0.0078125, %v2139_v0  ;;  %v3228_v0 = vld [vmem:[%s4435_s26 + $0x2] ss:$0 sm:$0xff] }
 0xe72   : > { %v2141_v4 = vpop.xlane.xlu0 %2140 }
 0xe73   : > { %v4770_v25 = vsub.f32 %v4749_v38, %v2146_v6  ;;  %v2147_v28 = vmul.f32 0.0078125, %v2141_v4 }
 0xe74   : > { %v2143_v30 = vpop.xlane.xlu1 %2142 }
 0xe75   : > { %v4773_v45 = vsub.f32 %v4751_v44, %v2147_v28  ;;  %v2148_v47 = vmul.f32 0.0078125, %v2143_v30  ;;  %v2154_v48 = vmul.f32 %v4770_v25, %v4770_v25 }
 0xe76   : > { %v2145_v50 = vpop.xlane.xlu0 %2144 }
 0xe77   : > { %v4778_v51 = vsub.f32 %v4754_v35, %v2148_v47  ;;  %v2149_v52 = vmul.f32 0.0078125, %v2145_v50  ;;  %2158 = vadd.xlane.f32.xlu1 %v2154_v48  ;;  %v2155_v53 = vmul.f32 %v4773_v45, %v4773_v45  ;;  %v3229_v48 = vld [vmem:[%s4435_s26 + $0x3] ss:$0 sm:$0xff] }
 0xe79   : > { %v4783_v54 = vsub.f32 %v4757_v13, %v2149_v52  ;;  %2160 = vadd.xlane.f32.xlu0 %v2155_v53  ;;  %v2156_v55 = vmul.f32 %v4778_v51, %v4778_v51 }
 0xe7b   : > { %2162 = vadd.xlane.f32.xlu1 %v2156_v55  ;;  %v2157_v49 = vmul.f32 %v4783_v54, %v4783_v54 }
 0xe7d   : > { %2164 = vadd.xlane.f32.xlu0 %v2157_v49 }
 0xf04   : > { %v2159_v33 = vpop.xlane.xlu1 %2158 }
 0xf05   : > { %v2166_v40 = vmul.f32 0.0078125, %v2159_v33  ;;  %v3776_v33 = vld [vmem:[%s4414_s16 + $0x30] sm:$0xff]  }
 0xf06   : > { %v2161_v41 = vpop.xlane.xlu0 %2160 }
 0xf07   : > { %v2170_v42 = vadd.f32 1e-05, %v2166_v40  ;;  %v2167_v43 = vmul.f32 0.0078125, %v2161_v41  ;;  %v3777_v40 = vld [vmem:[%s4414_s16 + $0xb0] sm:$0xff]   ;;  %v3778_v41 = vld [vmem:[%s4414_s16 + $0x78] sm:$0xff]  }
 0xf08   : > { %v2163_v37 = vpop.xlane.xlu1 %2162 }
 0xf09   : > { %3854 = vrsqrt.f32 %v2170_v42  ;;  %v2171_v57 = vadd.f32 1e-05, %v2167_v43  ;;  %v2168_v58 = vmul.f32 0.0078125, %v2163_v37  ;;  %v3779_v42 = vld [vmem:[%s4414_s16 + $0xf8] sm:$0xff]  }
 0xf0a   : > { %v2165_v32 = vpop.xlane.xlu0 %2164  ;;  %v3780_v43 = vld [vmem:[%s4414_s16 + $0x38] sm:$0xff]  }
 0xf0b   : > { %3856 = vrsqrt.f32 %v2171_v57  ;;  %v2172_v34 = vadd.f32 1e-05, %v2168_v58  ;;  %v2169_v36 = vmul.f32 0.0078125, %v2165_v32  ;;  %v3781_v37 = vld [vmem:[%s4414_s16 + $0xb8] sm:$0xff]   ;;  %v2232_v57 = vld [vmem:[%s4425_s15] sm:$0xf] }
 0xf0c   : > { %v2248_v58 = vsub.s32 3, %v4513_v15  ;;  %v2237_v32 = vrot.slane %v2232_v57, %v611_v16 }
 0xf0d   : > { %3858 = vrsqrt.f32 %v2172_v34  ;;  %v2173_v2 = vadd.f32 1e-05, %v2169_v36  ;;  %v2245_v34 = vrot.slane %v2232_v57, %v619_v20  ;;  %v2241_v36 = vrot.slane %v2232_v57, %v615_v18 }
 0xf0f   : > { %3860 = vrsqrt.f32 %v2173_v2  ;;  %v2249_v2 = vrot.slane %v2232_v57, %v2248_v58 }
 0xf13   : > { %v3855_v5 = vpop.eup %3854 }
 0xf14   : > { %v2178_v6 = vmul.f32 %v3855_v5, %v4770_v25 }
 0xf15   : > { %v3857_v4 = vpop.eup %3856 }
 0xf16   : > { %v2179_v28 = vmul.f32 %v3857_v4, %v4773_v45  ;;  %v2186_v30 = vmul.f32 %v3228_v0, %v2178_v6 }
 0xf17   : > { %v3859_v47 = vpop.eup %3858 }
 0xf18   : > { %v2187_v50 = vmul.f32 %v3228_v0, %v2179_v28  ;;  %v2194_v53 = vadd.f32 %v3229_v48, %v2186_v30  ;;  %v2180_v49 = vmul.f32 %v3859_v47, %v4778_v51 }
 0xf19   : > { %v3861_v52 = vpop.eup %3860 }
 0xf1a   : > { %v2195_v55 = vadd.f32 %v3229_v48, %v2187_v50  ;;  %v2181_v56 = vmul.f32 %v3861_v52, %v4783_v54  ;;  %v2188_v45 = vmul.f32 %v3228_v0, %v2180_v49  ;;  %v3756_v54 = vld [vmem:[%s4414_s16 + $0x8] sm:$0xff]  }
 0xf1c   : > { %v2198_v46 = vpack.c.bf16 %v2195_v55, %v2194_v53  ;;  %v2189_v25 = vmul.f32 %v3228_v0, %v2181_v56  ;;  %v2196_v1 = vadd.f32 %v3229_v48, %v2188_v45 }
 0xf1e   : > { %2447 = vmatmul.mubr.bf16.vlgmr.msra.gmra.mrb[44].mxu0 %v2198_v46  ;;  %2500 = vmatmul.mubr.bf16.vlgmr.msra.gmra.mrb[36].mxu1 %v2198_v46  ;;  %v2197_v51 = vadd.f32 %v3229_v48, %v2189_v25 }
 0xf1f   : > { %2456 = vmatprep.mubr.bf16.mxu0 %v4133_v39  ;;  %2509 = vmatprep.mubr.bf16.mxu1 %v4133_v39  ;;  %v3758_v39 = vld [vmem:[%s4414_s16 + $0x50] sm:$0xff]  }
 0xf20   : > { %3363 = vmatpush3.bf16.msra.mxu0 %v3752_v59  ;;  %3391 = vmatpush3.bf16.msra.mxu1 %v3753_v60  ;;  %v2199_v3 = vpack.c.bf16 %v2197_v51, %v2196_v1 }
 0xf21   : > { %3364 = vmatprep.subr.bf16.mxu0 %v3754_v61  ;;  %3392 = vmatprep.subr.bf16.mxu1 %v3755_v62 }
 0xf24   : > { %3365 = vmatpush3.bf16.msra.mxu0 %v3756_v54  ;;  %3393 = vmatpush3.bf16.msra.mxu1 %v3757_v63 }
 0xf25   : > { %3366 = vmatprep.subr.bf16.mxu0 %v3758_v39  ;;  %3394 = vmatprep.subr.bf16.mxu1 %v3759_v7 }
 0xf26   : > { %2457 = vmatmul.mubr.bf16.gmra.mrb[48].mxu0 %v2199_v3  ;;  %2510 = vmatmul.mubr.bf16.gmra.mrb[40].mxu1 %v2199_v3 }
 0xf28   : > { %3367 = vmatpush3.bf16.msra.mxu0 %v3760_v8  ;;  %3395 = vmatpush3.bf16.msra.mxu1 %v3761_v9 }
 0xf29   : > { %3368 = vmatprep.subr.bf16.mxu0 %v3762_v10  ;;  %3396 = vmatprep.subr.bf16.mxu1 %v3763_v11 }
 0xf2c   : > { %3369 = vmatpush3.bf16.msra.mxu0 %v3764_v12  ;;  %3397 = vmatpush3.bf16.msra.mxu1 %v3765_v14 }
 0xf2d   : > { %3370 = vmatprep.subr.bf16.mxu0 %v3766_v17  ;;  %3398 = vmatprep.subr.bf16.mxu1 %v3767_v19 }
 0xf30   : > { %3371 = vmatpush3.bf16.msra.mxu0 %v3768_v21  ;;  %3399 = vmatpush3.bf16.msra.mxu1 %v3769_v22 }
 0xf31   : > { %3372 = vmatprep.subr.bf16.mxu0 %v3770_v23  ;;  %3400 = vmatprep.subr.bf16.mxu1 %v3771_v24 }
 0xf34   : > { %3373 = vmatpush3.bf16.msra.mxu0 %v3772_v26  ;;  %3401 = vmatpush3.bf16.msra.mxu1 %v3773_v27 }
 0xf35   : > { %3374 = vmatprep.subr.bf16.mxu0 %v3774_v29  ;;  %3402 = vmatprep.subr.bf16.mxu1 %v3775_v31 }
 0xf38   : > { %3375 = vmatpush3.bf16.msra.mxu0 %v3776_v33  ;;  %3403 = vmatpush3.bf16.msra.mxu1 %v3777_v40 }
 0xf39   : > { %3376 = vmatprep.subr.bf16.mxu0 %v3778_v41  ;;  %3404 = vmatprep.subr.bf16.mxu1 %v3779_v42 }
 0xf3c   : > { %3377 = vmatpush3.bf16.msra.mxu0 %v3780_v43  ;;  %3405 = vmatpush3.bf16.msra.mxu1 %v3781_v37 }
 0xff1   : > { %v2448_v5 = vpop.f32.mrb[44].mxu0  ;;  %v2501_v0 = vpop.f32.mrb[36].mxu1 }
 0xff2   : > { %v2449_v6 = vadd.f32 %v2448_v5, %v2237_v32  ;;  %v2502_v4 = vadd.f32 %v2501_v0, %v2245_v34  ;;  %v2450_v28 = vpop.f32.mrb[45].mxu0  ;;  %v2503_v30 = vpop.f32.mrb[37].mxu1 }
 0xff3   : > { %v2451_v47 = vadd.f32 %v2450_v28, %v2241_v36  ;;  %v2504_v48 = vadd.f32 %v2503_v30, %v2249_v2  ;;  %v2452_v50 = vpop.f32.mrb[46].mxu0  ;;  %v2505_v52 = vpop.f32.mrb[38].mxu1 }
 0xff4   : > { %v2536_v53 = vmul.f32 0.70710677, %v2449_v6  ;;  %v2538_v55 = vmul.f32 0.70710677, %v2502_v4  ;;  %v2453_v20 = vadd.f32 %v2452_v50, %v2237_v32  ;;  %v4861_v56 = vadd.f32 %v2505_v52, %v2245_v34  ;;  %v2454_v15 = vpop.f32.mrb[47].mxu0  ;;  %v2507_v18 = vpop.f32.mrb[39].mxu1 }
 0xff5   : > { %v2537_v16 = vmul.f32 0.70710677, %v2451_v47  ;;  %v2539_v49 = vmul.f32 0.70710677, %v2504_v48  ;;  %v2455_v46 = vadd.f32 %v2454_v15, %v2241_v36  ;;  %v4863_v25 = vadd.f32 %v2507_v18, %v2249_v2 }
 0xff6   : > { %3862 = verf.f32 %v2536_v53  ;;  %v2540_v59 = vmul.f32 0.70710677, %v2453_v20  ;;  %v2542_v60 = vmul.f32 0.70710677, %v4861_v56  ;;  %v2520_v33 = vmul.f32 0.5, %v2449_v6 }
 0xff7   : > { %3864 = verf.f32 %v2538_v55  ;;  %v2541_v61 = vmul.f32 0.70710677, %v2455_v46  ;;  %v2543_v45 = vmul.f32 0.70710677, %v4863_v25  ;;  %v2522_v40 = vmul.f32 0.5, %v2502_v4 }
 0xff8   : > { %3866 = verf.f32 %v2537_v16  ;;  %v2521_v37 = vmul.f32 0.5, %v2451_v47  ;;  %v2526_v30 = vmul.f32 0.5, %v4861_v56  ;;  %v2525_v47 = vmul.f32 0.5, %v2455_v46 }
 0xff9   : > { %3868 = verf.f32 %v2539_v49  ;;  %v2458_v62 = vpop.f32.mrb[48].mxu0  ;;  %v2511_v54 = vpop.f32.mrb[40].mxu1 }
 0xffa   : > { %3870 = verf.f32 %v2540_v59  ;;  %v4867_v51 = vadd.f32 %v2458_v62, %v2237_v32  ;;  %v2460_v63 = vpop.f32.mrb[49].mxu0  ;;  %v4869_v1 = vadd.f32 %v2511_v54, %v2245_v34  ;;  %v2513_v39 = vpop.f32.mrb[41].mxu1 }
 0xffb   : > { %3872 = verf.f32 %v2542_v60  ;;  %v4871_v3 = vadd.f32 %v2460_v63, %v2241_v36  ;;  %v2462_v7 = vpop.f32.mrb[50].mxu0  ;;  %v4874_v9 = vadd.f32 %v2513_v39, %v2249_v2  ;;  %v2515_v10 = vpop.f32.mrb[42].mxu1 }
 0xffc   : > { %3874 = verf.f32 %v2541_v61  ;;  %v2544_v8 = vmul.f32 0.70710677, %v4867_v51  ;;  %v2464_v11 = vpop.f32.mrb[51].mxu0  ;;  %v2546_v12 = vmul.f32 0.70710677, %v4869_v1  ;;  %v2517_v14 = vpop.f32.mrb[43].mxu1  ;;  %v2463_v21 = vadd.f32 %v2462_v7, %v2237_v32 }
 0xffd   : > { %3876 = verf.f32 %v2543_v45  ;;  %v2545_v17 = vmul.f32 0.70710677, %v4871_v3  ;;  %v2547_v19 = vmul.f32 0.70710677, %v4874_v9  ;;  %v4879_v22 = vadd.f32 %v2515_v10, %v2245_v34 }
 0xffe   : > { %3878 = verf.f32 %v2544_v8  ;;  %v4881_v23 = vadd.f32 %v2464_v11, %v2241_v36  ;;  %v2548_v27 = vmul.f32 0.70710677, %v2463_v21  ;;  %v4883_v29 = vadd.f32 %v2517_v14, %v2249_v2 }
 0xfff   : > { %3880 = verf.f32 %v2546_v12  ;;  %v2550_v41 = vmul.f32 0.70710677, %v4879_v22  ;;  %v2523_v34 = vmul.f32 0.5, %v2504_v48  ;;  %v2524_v36 = vmul.f32 0.5, %v2453_v20 }
0x1000   : > { %v3863_v24 = vpop.eup %3862  ;;  %3882 = verf.f32 %v2545_v17  ;;  %v2549_v57 = vmul.f32 0.70710677, %v4881_v23  ;;  %v2551_v6 = vmul.f32 0.70710677, %v4883_v29  ;;  %v2527_v20 = vmul.f32 0.5, %v4863_v25 }
0x1001   : > { %v3865_v26 = vpop.eup %3864  ;;  %3884 = verf.f32 %v2547_v19  ;;  %v2568_v43 = vadd.f32 1.0, %v3863_v24  ;;  %v2528_v11 = vmul.f32 0.5, %v4867_v51  ;;  %v2530_v14 = vmul.f32 0.5, %v4869_v1 }
0x1002   : > { %v3867_v31 = vpop.eup %3866  ;;  %3886 = verf.f32 %v2548_v27  ;;  %v2570_v32 = vadd.f32 1.0, %v3865_v26  ;;  %v2532_v19 = vmul.f32 0.5, %v2463_v21  ;;  %v2529_v27 = vmul.f32 0.5, %v4871_v3 }
0x1003   : > { %v3869_v42 = vpop.eup %3868  ;;  %3888 = verf.f32 %v2550_v41  ;;  %v2569_v2 = vadd.f32 1.0, %v3867_v31  ;;  %v2584_v53 = vmul.f32 %v2568_v43, %v2520_v33  ;;  %v2534_v31 = vmul.f32 0.5, %v4879_v22 }
0x1004   : > { %v3871_v58 = vpop.eup %3870  ;;  %3890 = verf.f32 %v2549_v57  ;;  %v2571_v28 = vadd.f32 1.0, %v3869_v42  ;;  %v2586_v48 = vmul.f32 %v2570_v32, %v2522_v40  ;;  %v2533_v40 = vmul.f32 0.5, %v4881_v23 }
0x1005   : > { %v3873_v5 = vpop.eup %3872  ;;  %v2572_v0 = vadd.f32 1.0, %v3871_v58  ;;  %3892 = verf.f32 %v2551_v6  ;;  %v2585_v59 = vmul.f32 %v2569_v2, %v2521_v37  ;;  %v2531_v21 = vmul.f32 0.5, %v4874_v9  ;;  %v3262_v9 = vld [vmem:[%s4435_s26 + $0x5] ss:$0 sm:$0xff] }
0x1006   : > { %v3875_v4 = vpop.eup %3874  ;;  %v2574_v50 = vadd.f32 1.0, %v3873_v5  ;;  %v2587_v45 = vmul.f32 %v2571_v28, %v2523_v34  ;;  %v2535_v58 = vmul.f32 0.5, %v4883_v29 }
0x1007   : > { %v3877_v52 = vpop.eup %3876  ;;  %v2588_v55 = vmul.f32 %v2572_v0, %v2524_v36  ;;  %v2573_v16 = vadd.f32 1.0, %v3875_v4 }
0x1008   : > { %v2590_v49 = vmul.f32 %v2574_v50, %v2526_v30  ;;  %v2575_v15 = vadd.f32 1.0, %v3877_v52  ;;  %v3879_v18 = vpop.eup %3878 }
0x1009   : > { %v2600_v60 = vpack.c.bf16 %v2588_v55, %v2584_v53  ;;  %v2589_v61 = vmul.f32 %v2573_v16, %v2525_v47  ;;  %v3881_v62 = vpop.eup %3880  ;;  %v2576_v7 = vadd.f32 1.0, %v3879_v18 }
0x100a   : > { %v2602_v54 = vpack.c.bf16 %v2590_v49, %v2586_v48  ;;  %v2591_v56 = vmul.f32 %v2575_v15, %v2527_v20  ;;  %v3883_v63 = vpop.eup %3882  ;;  %v2578_v12 = vadd.f32 1.0, %v3881_v62 }
0x100b   : > { %v2601_v46 = vpack.c.bf16 %v2589_v61, %v2585_v59  ;;  %v3885_v39 = vpop.eup %3884  ;;  %v2577_v17 = vadd.f32 1.0, %v3883_v63  ;;  %v2592_v51 = vmul.f32 %v2576_v7, %v2528_v11 }
0x100c   : > { %v2603_v8 = vpack.c.bf16 %v2591_v56, %v2587_v45  ;;  %v3887_v10 = vpop.eup %3886  ;;  %v2579_v41 = vadd.f32 1.0, %v3885_v39  ;;  %v2594_v1 = vmul.f32 %v2578_v12, %v2530_v14 }
0x100d   : > { %2900 = vmatprep.mubr.bf16.mxu0 %v2601_v46  ;;  %v3889_v25 = vpop.eup %3888  ;;  %v2580_v24 = vadd.f32 1.0, %v3887_v10  ;;  %v2593_v32 = vmul.f32 %v2577_v17, %v2529_v27 }
0x100e   : > { %2949 = vmatprep.mubr.bf16.mxu1 %v2603_v8  ;;  %2901 = vmatmul.mubr.bf16.vlgmr.msra.gmra.mrb[52].mxu0 %v2600_v60  ;;  %v3891_v26 = vpop.eup %3890  ;;  %v2582_v33 = vadd.f32 1.0, %v3889_v25  ;;  %v2595_v5 = vmul.f32 %v2579_v41, %v2531_v21 }
0x100f   : > { %2950 = vmatmul.mubr.bf16.vlgmr.msra.gmra.mrb[44].mxu1 %v2602_v54  ;;  %v2596_v42 = vmul.f32 %v2580_v24, %v2532_v19  ;;  %v2581_v43 = vadd.f32 1.0, %v3891_v26  ;;  %v3893_v37 = vpop.eup %3892 }
0x1010   : > { %v2598_v57 = vmul.f32 %v2582_v33, %v2534_v31  ;;  %v2583_v34 = vadd.f32 1.0, %v3893_v37 }
0x1011   : > { %v2597_v3 = vmul.f32 %v2581_v43, %v2533_v40  ;;  %v2604_v22 = vpack.c.bf16 %v2596_v42, %v2592_v51 }
0x1012   : > { %v2606_v36 = vpack.c.bf16 %v2598_v57, %v2594_v1  ;;  %v2599_v23 = vmul.f32 %v2583_v34, %v2535_v58 }
0x1013   : > { %v2605_v2 = vpack.c.bf16 %v2597_v3, %v2593_v32 }
0x1014   : > { %v2607_v0 = vpack.c.bf16 %v2599_v23, %v2595_v5 }
0x1015   : > { %2908 = vmatprep.mubr.bf16.mxu0 %v2605_v2 }
0x1016   : > { %2909 = vmatmul.mubr.bf16.gmra.mrb[56].mxu0 %v2604_v22  ;;  %2957 = vmatprep.mubr.bf16.mxu1 %v2607_v0 }
0x1017   : > { %2958 = vmatmul.mubr.bf16.gmra.mrb[48].mxu1 %v2606_v36 }
0x10e1   : > { %v3378_v6 = vpop.f32.mrb[52].mxu0 }
0x10e2   : > { %v3406_v4 = vpop.f32.mrb[44].mxu1  ;;  %v3379_v28 = vpop.f32.mrb[53].mxu0 }
0x10e3   : > { %v3380_v30 = vadd.f32 %v3379_v28, %v3378_v6  ;;  %v3407_v29 = vpop.f32.mrb[45].mxu1  ;;  %v3381_v50 = vpop.f32.mrb[54].mxu0 }
0x10e4   : > { %v3408_v47 = vadd.f32 %v3407_v29, %v3406_v4  ;;  %v3409_v52 = vpop.f32.mrb[46].mxu1  ;;  %v3382_v53 = vpop.f32.mrb[55].mxu0 }
0x10e5   : > { %v2903_v55 = vadd.f32 %v3380_v30, %v3262_v9  ;;  %v3383_v16 = vadd.f32 %v3382_v53, %v3381_v50  ;;  %v3410_v48 = vpop.f32.mrb[47].mxu1 }
0x10e6   : > { %v3411_v49 = vadd.f32 %v3410_v48, %v3409_v52 }
0x10e7   : > { %v2952_v20 = vadd.f32 %v3408_v47, %v2903_v55  ;;  %v2906_v15 = vadd.f32 %v3383_v16, %v3262_v9 }
0x10e9   : > { %v2966_v18 = vadd.f32 %v2952_v20, %v4749_v38  ;;  %v2955_v59 = vadd.f32 %v3411_v49, %v2906_v15  ;;  %v3384_v60 = vpop.f32.mrb[56].mxu0 }
0x10ea   : > { %v3385_v62 = vpop.f32.mrb[57].mxu0  ;;  %v3412_v45 = vpop.f32.mrb[48].mxu1 }
0x10eb   : > { %2970 = vst [vmem:[#allocation2] sm:$0xff] %v2966_v18  ;;  %v2967_v61 = vadd.f32 %v2955_v59, %v4751_v44  ;;  %v3386_v54 = vadd.f32 %v3385_v62, %v3384_v60  ;;  %v3387_v56 = vpop.f32.mrb[58].mxu0  ;;  %v3413_v63 = vpop.f32.mrb[49].mxu1  ;;  %2978 = vst [vmem:[#allocation12] sm:$0xff] (!%p3295_p12), %v2966_v18 }
0x10ec   : > { %v3388_v46 = vpop.f32.mrb[59].mxu0  ;;  %v3414_v7 = vadd.f32 %v3413_v63, %v3412_v45  ;;  %v3415_v8 = vpop.f32.mrb[50].mxu1 }
0x10ed   : > { %2971 = vst [vmem:[#allocation2 + $0x8] sm:$0xff] %v2967_v61  ;;  %v2911_v39 = vadd.f32 %v3386_v54, %v3262_v9  ;;  %v3389_v10 = vadd.f32 %v3388_v46, %v3387_v56  ;;  %v3416_v11 = vpop.f32.mrb[51].mxu1  ;;  %2979 = vst [vmem:[#allocation12 + $0x8] sm:$0xff] (!%p3295_p12), %v2967_v61 }
0x10ee   : > { %v3417_v38 = vadd.f32 %v3416_v11, %v3415_v8 }
0x10ef   : > { %v2960_v12 = vadd.f32 %v3414_v7, %v2911_v39  ;;  %v2914_v25 = vadd.f32 %v3389_v10, %v3262_v9  ;;  %2977 = sbr.rel (%p3295_p12) target bundleno = 4342 (0x10f6), region = 80 }
0x10f1   : > { %v2968_v14 = vadd.f32 %v2960_v12, %v4754_v35  ;;  %v2963_v17 = vadd.f32 %v3417_v38, %v2914_v25 }
0x10f3   : > { %2972 = vst [vmem:[#allocation2 + $0x10] sm:$0xff] %v2968_v14  ;;  %v2969_v44 = vadd.f32 %v2963_v17, %v4757_v13  ;;  %2980 = vst [vmem:[#allocation12 + $0x10] sm:$0xff] (!%p3295_p12), %v2968_v14 }
0x10f5   : > { %2973 = vst [vmem:[#allocation2 + $0x18] sm:$0xff] %v2969_v44  ;;  %2981 = vst [vmem:[#allocation12 + $0x18] sm:$0xff] (!%p3295_p12), %v2969_v44 }
0x10f6 PF: > { %p3612_p3 = scmp.eq.s32.totalorder %s4211_s13, 1  ;;  %s4139_s30 = smov [#allocation12]  }
0x10f7   : > { %s2988_s24 = sshll.u32 %s4139_s30, 4  ;;  %s2989_s24 = int_to_ptr.vmem [resolvable:$true] %s2988_s24 }
0x10f8   : > { %s4044_s16 = scalar_lea.vmem %s2989_s24, 512  ;;  %p4051_p0 = scmp.lt.s32.totalorder %s2989_s24, %s2989_s24 }
0x10f9   : > { %p4045_p11 = scmp.ne.s32.totalorder %s2989_s24, %s4044_s16  ;;  %p4052_p7 = scmp.lt.s32.totalorder %s4044_s16, %s4044_s16 }
0x10fb   : > { %p4046_p13 = pnand %p4045_p11, %p3612_p3  ;;  %p4053_p1 = por %p4052_p7, %p4051_p0 }
0x10fd   : > { %p4047_p9 = pneg %p4046_p13 }
0x10ff   : > { %p4054_p10 = pnand %p4053_p1, %p4047_p9 }
0x1101   : > { %4057 = shalt.err (!%p4054_p10)
}
0x1102   : > { %s4058_s27 = scalar_lea.hbm %s4948_s9, 512 }
0x1103   : > { %p4059_p5 = scmp.ne.s32.totalorder %s4948_s9, %s4058_s27  ;;  %p4064_p4 = scmp.lt.u32.totalorder %s4058_s27, %s4948_s9 }
0x1105   : > { %p4060_p8 = pnand %p4059_p5, %p3612_p3 }
0x1107   : > { %p4061_p2 = pneg %p4060_p8 }
0x1109   : > { %p4066_p6 = pnand %p4064_p4, %p4061_p2 }
0x110b   : > { %4069 = shalt.err (!%p4066_p6)
}
0x110c   : > { %s4140_s23 = smov 128   ;;  %s4141_s22 = smov 8  }
0x110d   : > { %3594 = dma.vmem_to_hbm [thread:$0]  (%p3612_p3), %s2989_s24, 512, %s4948_s9, [#allocation6], %s4140_s23, %s4140_s23, %s4141_s22  }
0x110e   : > { %4103 = dma.done.wait (%p3612_p3), [#allocation6], 512  }
0x110f   : > { %4105 = vsyncadd (%p3612_p3), [#allocation6], 4294966784 }
0x1110 PF: > { %s4977_s4 = sld [smem:[#allocation22_spill]]  ;;  %s4978_s11 = sld [smem:[#allocation23_spill]] }
0x1111   : > { %p26_p12 = scmp.ge.s32.totalorder %s4214_s14, 4   ;;  %s4979_s30 = smov %s4112_s10 }
0x1112   : > { %s4981_s12 = smov %s4214_s14 }
0x1113   :  { %28 = sbr.rel (!%p26_p12) target bundleno = 13 (0xd), region = 147 }
0x1116   : > { %s4980_s10 = smov %s4977_s4 }
0x111a   :  { %3004 = vsyncpa [#allocation5], 1 }
0x111b   :  { %3006 = vsyncpa [#allocation5 + $0x1], 1 }
0x111c   :  { %3007 = vsyncpa [#allocation8], 1 }
0x111d   :  { %3009 = vsyncpa [#allocation8 + $0x1], 1 }
0x111e   :  { %3010 = vsyncpa [#allocation11], 1 }
0x111f   :  { %3012 = vsyncpa [#allocation11 + $0x1], 1 }
0x1120   :  { %3013 = vsyncpa [#allocation6], 1 }
0x1121   :  { %3015 = vsyncpa [#allocation6 + $0x1], 1 }
0x1122   :  { %3016 = vsyncmov [#allocation3] }
0x1125   :  { %s3017_s13 = vpop.sfrf %3016 }
0x1126   :  { %p3300_p3 = scmp.ne.s32.totalorder %s3017_s13, 0 }
0x1128   :  { %3021 = shalt.err (%p3300_p3)  }

</bundles_post_ra>
